<compile_context>
chip_gen: v5e
topology: v5e:2x2
jax: 0.10.0
libtpu: 0.0.40
codegen_flags: <defaults>
</compile_context>

<pallas_src>
import functools

import numpy as np
import jax
import jax.numpy as jnp
from jax import lax
from jax.experimental import pallas as pl
from jax.experimental.pallas import tpu as pltpu

_EPS = 1e-5
_INV_SQRT2 = 0.7071067811865476
_INV_1414 = 1.0 / 1.414                      # residual divide -> multiply

_CPARAMS = pltpu.CompilerParams(
    dimension_semantics=("parallel",),       # batch axis: shard across TCs on v7x
    vmem_limit_bytes=32 * 1024 * 1024,       # explicit; per-step footprint is a few image tiles
)


# ----------------------------- in-kernel math helpers -----------------------------
def _erf_approx(x):
    # Abramowitz & Stegun 7.1.26 (|err| < 1.5e-7): +, *, exp, EUP reciprocal only.
    a1, a2, a3, a4, a5 = 0.254829592, -0.284496736, 1.421413741, -1.453152027, 1.061405429
    p = 0.3275911
    sign = jnp.where(x < 0.0, -1.0, 1.0)
    ax = jnp.abs(x)
    d = 1.0 + p * ax
    t = pl.reciprocal(d, approx=True)        # EUP slot (free relative to VALU)
    t = t * (2.0 - d * t)                    # one Newton step -> full f32 accuracy
    poly = ((((a5 * t + a4) * t + a3) * t + a2) * t + a1) * t
    return sign * (1.0 - poly * jnp.exp(-ax * ax))


def _gelu_exact(x):
    # matches torch.nn.GELU(approximate='none')
    return 0.5 * x * (1.0 + _erf_approx(x * _INV_SQRT2))


def _conv3x3(x, mask, w_ref, b_ref, *, offsets, fuse_taps, mxu_dtype):
    """3x3 same-padding conv over one image.

    x: (C, H*W) f32, flattened spatial on lanes.  mask: (9, H*W) 0/1 halo mask.
    Taps are built with pltpu.roll (XLU) + mask.  Contraction is either one fused
    (Cout, 9C)@(9C, HW) matmul (small C) or 9 accumulating per-tap matmuls
    (wide C: no 9x-activation tap materialization).
    """
    hw = x.shape[1]
    taps = []
    for t, off in enumerate(offsets):
        s = (-off) % hw                       # result[:, p] = x[:, (p + off) % hw]
        xt = x if s == 0 else pltpu.roll(x, s, 1)
        taps.append(xt * mask[t:t + 1, :])
    if fuse_taps:
        tap_mat = jnp.concatenate(taps, axis=0).astype(mxu_dtype)    # (9C, HW)
        y = jnp.dot(w_ref[...].astype(mxu_dtype), tap_mat,
                    preferred_element_type=jnp.float32)
    else:
        y = None
        for t in range(9):
            d = jnp.dot(w_ref[t].astype(mxu_dtype), taps[t].astype(mxu_dtype),
                        preferred_element_type=jnp.float32)
            y = d if y is None else y + d
    return y + b_ref[...]


# ----------------------------------- kernels --------------------------------------
def _conv_stats_kernel(x_ref, mask_ref, w_ref, b_ref, y_ref, stats_ref, *,
                       offsets, fuse_taps, mxu_dtype):
    """y = conv(x) + b; emit per-image per-channel (sum, sum of squares)."""
    y = _conv3x3(x_ref[0], mask_ref[...], w_ref, b_ref,
                 offsets=offsets, fuse_taps=fuse_taps, mxu_dtype=mxu_dtype)
    y_ref[0] = y
    stats_ref[0, :, 0:1] = jnp.sum(y, axis=1, keepdims=True)
    stats_ref[0, :, 1:2] = jnp.sum(y * y, axis=1, keepdims=True)


def _bn_gelu_conv_stats_kernel(y1_ref, scale_ref, shift_ref, mask_ref, w_ref, b_ref,
                               y2_ref, stats_ref, *, offsets, fuse_taps, mxu_dtype):
    """x1 = GELU(BN1(y1)) (single FMA affine); y2 = conv2(x1) + b2; emit stats of y2."""
    x1 = _gelu_exact(y1_ref[0] * scale_ref[...] + shift_ref[...])
    y2 = _conv3x3(x1, mask_ref[...], w_ref, b_ref,
                  offsets=offsets, fuse_taps=fuse_taps, mxu_dtype=mxu_dtype)
    y2_ref[0] = y2
    stats_ref[0, :, 0:1] = jnp.sum(y2, axis=1, keepdims=True)
    stats_ref[0, :, 1:2] = jnp.sum(y2 * y2, axis=1, keepdims=True)


def _finalize_kernel(y2_ref, scale2_ref, shift2_ref, o_ref):
    o_ref[0] = _gelu_exact(y2_ref[0] * scale2_ref[...] + shift2_ref[...])


def _finalize_res_x_kernel(y2_ref, scale2_ref, shift2_ref, x_ref, o_ref):
    x2 = _gelu_exact(y2_ref[0] * scale2_ref[...] + shift2_ref[...])
    o_ref[0] = (x_ref[0] + x2) * _INV_1414


def _finalize_res_x1_kernel(y2_ref, scale2_ref, shift2_ref,
                            y1_ref, scale1_ref, shift1_ref, o_ref):
    # Recompute x1 from y1 (elementwise) instead of writing/reading it to/from HBM.
    x2 = _gelu_exact(y2_ref[0] * scale2_ref[...] + shift2_ref[...])
    x1 = _gelu_exact(y1_ref[0] * scale1_ref[...] + shift1_ref[...])
    o_ref[0] = (x1 + x2) * _INV_1414


# ------------------------------- wrapper helpers -----------------------------------
def _img_spec(c, hw):
    return pl.BlockSpec((1, c, hw), lambda n: (n, 0, 0))


def _const_spec(shape):
    nd = len(shape)
    return pl.BlockSpec(tuple(shape), lambda n, _nd=nd: (0,) * _nd)


def _build_tap_masks(H, W):
    """mask[t, h*W + w] = 1 iff 3x3 tap t = dy*3+dx reads inside the image."""
    m = np.zeros((9, H * W), np.float32)
    for dy in range(3):
        for dx in range(3):
            t = dy * 3 + dx
            for h in range(H):
                if not (0 <= h + dy - 1 < H):
                    continue
                for w in range(W):
                    if 0 <= w + dx - 1 < W:
                        m[t, h * W + w] = 1.0
    return m


def _reshape_weight(w, fuse):
    cout, cin = w.shape[0], w.shape[1]
    if fuse:    # (Cout, 9*Cin), tap-major columns (matches tap concat order)
        return jnp.transpose(w, (0, 2, 3, 1)).reshape(cout, 9 * cin).astype(jnp.float32)
    # (9, Cout, Cin): w9[t] = w[:, :, ky, kx], t = ky*3 + kx
    return jnp.transpose(w, (2, 3, 0, 1)).reshape(9, cout, cin).astype(jnp.float32)


def _bn_affine(stats, gamma, beta, count):
    """Fold training-mode (biased-variance) BatchNorm into per-channel scale/shift."""
    s = jnp.sum(stats, axis=0)                       # (Cout, 2): [sum, sumsq] over N*H*W
    mean = s[:, 0:1] / count
    var = s[:, 1:2] / count - mean * mean
    scale = gamma * lax.rsqrt(var + _EPS)
    shift = beta - mean * scale
    return scale, shift


@functools.partial(jax.jit, static_argnames=("is_res", "tap_mode", "mxu_dtype"))
def residual_conv_block(x_nchw, params, *, is_res=False, tap_mode="auto",
                        mxu_dtype=jnp.float32):
    """Forward of ResidualConvBlock.  x: (N, Cin, H, W) f32 -> (N, Cout, H, W) f32."""
    N, Cin, H, W = x_nchw.shape
    Cout = params['w1'].shape[0]
    HW = H * W
    same_channels = (Cin == Cout)
    count = float(N * HW)

    if tap_mode == "auto":
        fuse1, fuse2 = Cin < 128, Cout < 128     # wide C -> per-tap accumulate (no 9x scratch)
    elif tap_mode == "fused":
        fuse1 = fuse2 = True
    elif tap_mode == "accum":
        fuse1 = fuse2 = False
    else:
        raise ValueError(f"unknown tap_mode {tap_mode!r}")

    # Free reshapes only (no NCHW <-> (C,NHW) transposes): spatial flattened on lanes.
    x_r = x_nchw.reshape(N, Cin, HW).astype(jnp.float32)
    mask = jnp.asarray(_build_tap_masks(H, W))                 # (9, HW), batch-invariant
    offsets = tuple((dy - 1) * W + (dx - 1) for dy in range(3) for dx in range(3))

    w1 = _reshape_weight(params['w1'], fuse1)
    w2 = _reshape_weight(params['w2'], fuse2)
    col = lambda v: v.reshape(Cout, 1).astype(jnp.float32)
    b1, g1, bt1 = col(params['b1']), col(params['g1']), col(params['bt1'])
    b2, g2, bt2 = col(params['b2']), col(params['g2']), col(params['bt2'])

    act_shape = jax.ShapeDtypeStruct((N, Cout, HW), jnp.float32)
    stats_shape = jax.ShapeDtypeStruct((N, Cout, 2), jnp.float32)
    stats_spec = pl.BlockSpec((1, Cout, 2), lambda n: (n, 0, 0))

    # ---- phase 1: conv1 + per-image BN partial sums --------------------------------
    y1, stats1 = pl.pallas_call(
        functools.partial(_conv_stats_kernel, offsets=offsets,
                          fuse_taps=fuse1, mxu_dtype=mxu_dtype),
        grid=(N,),
        in_specs=[_img_spec(Cin, HW), _const_spec(mask.shape),
                  _const_spec(w1.shape), _const_spec(b1.shape)],
        out_specs=(_img_spec(Cout, HW), stats_spec),
        out_shape=(act_shape, stats_shape),
        compiler_params=_CPARAMS,
    )(x_r, mask, w1, b1)
    scale1, shift1 = _bn_affine(stats1, g1, bt1, count)

    # ---- phase 2: BN1 affine + GELU + conv2 + per-image BN partial sums ------------
    y2, stats2 = pl.pallas_call(
        functools.partial(_bn_gelu_conv_stats_kernel, offsets=offsets,
                          fuse_taps=fuse2, mxu_dtype=mxu_dtype),
        grid=(N,),
        in_specs=[_img_spec(Cout, HW), _const_spec(scale1.shape), _const_spec(shift1.shape),
                  _const_spec(mask.shape), _const_spec(w2.shape), _const_spec(b2.shape)],
        out_specs=(_img_spec(Cout, HW), stats_spec),
        out_shape=(act_shape, stats_shape),
        compiler_params=_CPARAMS,
    )(y1, scale1, shift1, mask, w2, b2)
    scale2, shift2 = _bn_affine(stats2, g2, bt2, count)

    # ---- phase 3: BN2 affine + GELU (+ residual * 1/1.414) -------------------------
    if not is_res:
        kernel_c = _finalize_kernel
        ops = (y2, scale2, shift2)
        specs = [_img_spec(Cout, HW), _const_spec(scale2.shape), _const_spec(shift2.shape)]
    elif same_channels:
        kernel_c = _finalize_res_x_kernel
        ops = (y2, scale2, shift2, x_r)
        specs = [_img_spec(Cout, HW), _const_spec(scale2.shape), _const_spec(shift2.shape),
                 _img_spec(Cin, HW)]
    else:
        kernel_c = _finalize_res_x1_kernel
        ops = (y2, scale2, shift2, y1, scale1, shift1)
        specs = [_img_spec(Cout, HW), _const_spec(scale2.shape), _const_spec(shift2.shape),
                 _img_spec(Cout, HW), _const_spec(scale1.shape), _const_spec(shift1.shape)]

    out = pl.pallas_call(
        kernel_c,
        grid=(N,),
        in_specs=specs,
        out_specs=_img_spec(Cout, HW),
        out_shape=act_shape,
        compiler_params=_CPARAMS,
    )(*ops)

    return out.reshape(N, Cout, H, W)


# ----- pure-JAX reference (mirrors the PyTorch module, training-mode BN) -----------
def reference(x, p, *, is_res=False):
    def conv_bn_gelu(x, w, b, g, bt):
        y = lax.conv_general_dilated(x, w, (1, 1), ((1, 1), (1, 1)),
                                     dimension_numbers=('NCHW', 'OIHW', 'NCHW'))
        y = y + b[None, :, None, None]
        m = y.mean(axis=(0, 2, 3), keepdims=True)
        v = ((y - m) ** 2).mean(axis=(0, 2, 3), keepdims=True)
        y = (y - m) / jnp.sqrt(v + _EPS) * g[None, :, None, None] + bt[None, :, None, None]
        return 0.5 * y * (1.0 + lax.erf(y * _INV_SQRT2))

    x1 = conv_bn_gelu(x, p['w1'], p['b1'], p['g1'], p['bt1'])
    x2 = conv_bn_gelu(x1, p['w2'], p['b2'], p['g2'], p['bt2'])
    if is_res:
        res = x if x.shape[1] == x2.shape[1] else x1
        return (res + x2) / 1.414
    return x2


if __name__ == "__main__":
    key = jax.random.PRNGKey(0)
    ks = jax.random.split(key, 24)

    def make_params(cin, cout, keys):
        return {
            'w1': 0.3 * jax.random.normal(keys[0], (cout, cin, 3, 3), jnp.float32),
            'b1': 0.1 * jax.random.normal(keys[1], (cout,), jnp.float32),
            'g1': 1.0 + 0.1 * jax.random.normal(keys[2], (cout,), jnp.float32),
            'bt1': 0.1 * jax.random.normal(keys[3], (cout,), jnp.float32),
            'w2': 0.3 * jax.random.normal(keys[4], (cout, cout, 3, 3), jnp.float32),
            'b2': 0.1 * jax.random.normal(keys[5], (cout,), jnp.float32),
            'g2': 1.0 + 0.1 * jax.random.normal(keys[6], (cout,), jnp.float32),
            'bt2': 0.1 * jax.random.normal(keys[7], (cout,), jnp.float32),
        }

    def check(out, ref, shape, atol, rtol):
        out = jax.block_until_ready(out)
        np.testing.assert_allclose(np.asarray(out), np.asarray(ref), atol=atol, rtol=rtol)
        assert out.shape == shape

    # 1) default constructor path: is_res=False, Cin != Cout (fused small-C taps, f32 MXU)
    N, Cin, Cout, H, W = 2, 4, 8, 16, 16
    x = jax.random.normal(ks[0], (N, Cin, H, W), jnp.float32)
    params = make_params(Cin, Cout, ks[1:9])
    ref = reference(x, params, is_res=False)
    check(residual_conv_block(x, params, is_res=False), ref, (N, Cout, H, W), 1e-3, 1e-3)

    # 2) residual path, same channels: out = (x + x2) / 1.414
    xr = jax.random.normal(ks[9], (N, Cout, H, W), jnp.float32)
    params_r = make_params(Cout, Cout, ks[10:18])
    ref_r = reference(xr, params_r, is_res=True)
    check(residual_conv_block(xr, params_r, is_res=True), ref_r, (N, Cout, H, W), 1e-3, 1e-3)

    # 3) residual path with Cin != Cout (out = (x1 + x2)/1.414), exercising the
    #    per-tap accumulating (wide-C / production) matmul path.
    ref_a = reference(x, params, is_res=True)
    check(residual_conv_block(x, params, is_res=True, tap_mode="accum"),
          ref_a, (N, Cout, H, W), 1e-3, 1e-3)

    # 4) bf16 MXU inputs (v6e/v7x lever) with f32 accumulation/BN/GELU: loose sanity check.
    check(residual_conv_block(x, params, is_res=False, mxu_dtype=jnp.bfloat16),
          ref, (N, Cout, H, W), 1e-1, 1e-1)

    print("KERNEL_OK")
</pallas_src>

<mosaic_0001>
module attributes {stable_mosaic.version = 11 : i64} {
  func.func @_conv_stats_kernel(%arg0: i32, %arg1: memref<1x4x256xf32, #tpu.memory_space<vmem>>, %arg2: memref<9x256xf32, #tpu.memory_space<vmem>>, %arg3: memref<8x36xf32, #tpu.memory_space<vmem>>, %arg4: memref<8x1xf32, #tpu.memory_space<vmem>>, %arg5: memref<1x8x256xf32, #tpu.memory_space<vmem>>, %arg6: memref<1x8x2xf32, #tpu.memory_space<vmem>>) attributes {dimension_semantics = [#tpu.dimension_semantics<parallel>], iteration_bounds = array<i64: 2>, scalar_prefetch = 0 : i64, scratch_operands = 0 : i64, tpu.core_type = #tpu.core_type<tc>, window_params = [{transform_indices = @transform_0, window_bounds = array<i64: 1, 4, 256>}, {pipeline_mode = #tpu.pipeline_mode<synchronous>, transform_indices = @transform_1, window_bounds = array<i64: 9, 256>}, {pipeline_mode = #tpu.pipeline_mode<synchronous>, transform_indices = @transform_2, window_bounds = array<i64: 8, 36>}, {pipeline_mode = #tpu.pipeline_mode<synchronous>, transform_indices = @transform_3, window_bounds = array<i64: 8, 1>}, {transform_indices = @transform_4, window_bounds = array<i64: 1, 8, 256>}, {transform_indices = @transform_5, window_bounds = array<i64: 1, 8, 2>}]} {
    %c0 = arith.constant 0 : index
    %c0_0 = arith.constant 0 : index
    %c0_1 = arith.constant 0 : index
    %0 = vector.load %arg1[%c0, %c0_0, %c0_1] : memref<1x4x256xf32, #tpu.memory_space<vmem>>, vector<1x4x256xf32>
    %1 = vector.shape_cast %0 : vector<1x4x256xf32> to vector<4x256xf32>
    %c0_2 = arith.constant 0 : index
    %c0_3 = arith.constant 0 : index
    %2 = vector.load %arg2[%c0_2, %c0_3] : memref<9x256xf32, #tpu.memory_space<vmem>>, vector<9x256xf32>
    %c17_i32 = arith.constant 17 : i32
    %3 = tpu.dynamic_rotate %1 by %c17_i32 dim 1 : vector<4x256xf32>, i32 -> vector<4x256xf32>
    %4 = vector.extract_strided_slice %2 {offsets = [0, 0], sizes = [1, 256], strides = [1, 1]} : vector<9x256xf32> to vector<1x256xf32>
    %5 = vector.broadcast %4 : vector<1x256xf32> to vector<4x256xf32>
    %6 = arith.mulf %3, %5 : vector<4x256xf32>
    %c16_i32 = arith.constant 16 : i32
    %7 = tpu.dynamic_rotate %1 by %c16_i32 dim 1 : vector<4x256xf32>, i32 -> vector<4x256xf32>
    %8 = vector.extract_strided_slice %2 {offsets = [1, 0], sizes = [1, 256], strides = [1, 1]} : vector<9x256xf32> to vector<1x256xf32>
    %9 = vector.broadcast %8 : vector<1x256xf32> to vector<4x256xf32>
    %10 = arith.mulf %7, %9 : vector<4x256xf32>
    %c15_i32 = arith.constant 15 : i32
    %11 = tpu.dynamic_rotate %1 by %c15_i32 dim 1 : vector<4x256xf32>, i32 -> vector<4x256xf32>
    %12 = vector.extract_strided_slice %2 {offsets = [2, 0], sizes = [1, 256], strides = [1, 1]} : vector<9x256xf32> to vector<1x256xf32>
    %13 = vector.broadcast %12 : vector<1x256xf32> to vector<4x256xf32>
    %14 = arith.mulf %11, %13 : vector<4x256xf32>
    %c1_i32 = arith.constant 1 : i32
    %15 = tpu.dynamic_rotate %1 by %c1_i32 dim 1 : vector<4x256xf32>, i32 -> vector<4x256xf32>
    %16 = vector.extract_strided_slice %2 {offsets = [3, 0], sizes = [1, 256], strides = [1, 1]} : vector<9x256xf32> to vector<1x256xf32>
    %17 = vector.broadcast %16 : vector<1x256xf32> to vector<4x256xf32>
    %18 = arith.mulf %15, %17 : vector<4x256xf32>
    %19 = vector.extract_strided_slice %2 {offsets = [4, 0], sizes = [1, 256], strides = [1, 1]} : vector<9x256xf32> to vector<1x256xf32>
    %20 = vector.broadcast %19 : vector<1x256xf32> to vector<4x256xf32>
    %21 = arith.mulf %1, %20 : vector<4x256xf32>
    %c255_i32 = arith.constant 255 : i32
    %22 = tpu.dynamic_rotate %1 by %c255_i32 dim 1 : vector<4x256xf32>, i32 -> vector<4x256xf32>
    %23 = vector.extract_strided_slice %2 {offsets = [5, 0], sizes = [1, 256], strides = [1, 1]} : vector<9x256xf32> to vector<1x256xf32>
    %24 = vector.broadcast %23 : vector<1x256xf32> to vector<4x256xf32>
    %25 = arith.mulf %22, %24 : vector<4x256xf32>
    %c241_i32 = arith.constant 241 : i32
    %26 = tpu.dynamic_rotate %1 by %c241_i32 dim 1 : vector<4x256xf32>, i32 -> vector<4x256xf32>
    %27 = vector.extract_strided_slice %2 {offsets = [6, 0], sizes = [1, 256], strides = [1, 1]} : vector<9x256xf32> to vector<1x256xf32>
    %28 = vector.broadcast %27 : vector<1x256xf32> to vector<4x256xf32>
    %29 = arith.mulf %26, %28 : vector<4x256xf32>
    %c240_i32 = arith.constant 240 : i32
    %30 = tpu.dynamic_rotate %1 by %c240_i32 dim 1 : vector<4x256xf32>, i32 -> vector<4x256xf32>
    %31 = vector.extract_strided_slice %2 {offsets = [7, 0], sizes = [1, 256], strides = [1, 1]} : vector<9x256xf32> to vector<1x256xf32>
    %32 = vector.broadcast %31 : vector<1x256xf32> to vector<4x256xf32>
    %33 = arith.mulf %30, %32 : vector<4x256xf32>
    %c239_i32 = arith.constant 239 : i32
    %34 = tpu.dynamic_rotate %1 by %c239_i32 dim 1 : vector<4x256xf32>, i32 -> vector<4x256xf32>
    %35 = vector.extract_strided_slice %2 {offsets = [8, 0], sizes = [1, 256], strides = [1, 1]} : vector<9x256xf32> to vector<1x256xf32>
    %36 = vector.broadcast %35 : vector<1x256xf32> to vector<4x256xf32>
    %37 = arith.mulf %34, %36 : vector<4x256xf32>
    %38 = tpu.concatenate %6, %10, %14, %18, %21, %25, %29, %33, %37 in 0 : vector<4x256xf32>, vector<4x256xf32>, vector<4x256xf32>, vector<4x256xf32>, vector<4x256xf32>, vector<4x256xf32>, vector<4x256xf32>, vector<4x256xf32>, vector<4x256xf32> -> vector<36x256xf32>
    %c0_4 = arith.constant 0 : index
    %c0_5 = arith.constant 0 : index
    %39 = vector.load %arg3[%c0_4, %c0_5] : memref<8x36xf32, #tpu.memory_space<vmem>>, vector<8x36xf32>
    %cst = arith.constant dense<0.000000e+00> : vector<8x256xf32>
    %40 = tpu.matmul %39, %38, %cst {dimension_numbers = #tpu.dot_dimension_numbers<[1], [0], [0], [1], [0, 0, 1, 1], [], []>} : vector<8x36xf32>, vector<36x256xf32>, vector<8x256xf32> -> vector<8x256xf32>
    %c0_6 = arith.constant 0 : index
    %c0_7 = arith.constant 0 : index
    %41 = vector.load %arg4[%c0_6, %c0_7] : memref<8x1xf32, #tpu.memory_space<vmem>>, vector<8x1xf32>
    %42 = vector.broadcast %41 : vector<8x1xf32> to vector<8x256xf32>
    %43 = arith.addf %40, %42 : vector<8x256xf32>
    %c0_8 = arith.constant 0 : index
    %c0_9 = arith.constant 0 : index
    %c0_10 = arith.constant 0 : index
    %44 = vector.load %arg5[%c0_8, %c0_9, %c0_10] : memref<1x8x256xf32, #tpu.memory_space<vmem>>, vector<1x8x256xf32>
    %45 = vector.shape_cast %44 : vector<1x8x256xf32> to vector<8x256xf32>
    %46 = vector.shape_cast %43 : vector<8x256xf32> to vector<1x8x256xf32>
    tpu.vector_store %arg5[%c0_8, %c0_9, %c0_10], %46 {strides = array<i32>} : memref<1x8x256xf32, #tpu.memory_space<vmem>>, vector<1x8x256xf32>,
    %cst_11 = arith.constant dense<0.000000e+00> : vector<8xf32>
    %47 = vector.multi_reduction <add>, %43, %cst_11 [1] : vector<8x256xf32> to vector<8xf32>
    %48 = vector.shape_cast %47 : vector<8xf32> to vector<8x1xf32>
    %c0_12 = arith.constant 0 : index
    %c0_13 = arith.constant 0 : index
    %c0_14 = arith.constant 0 : index
    %49 = vector.load %arg6[%c0_12, %c0_13, %c0_14] : memref<1x8x2xf32, #tpu.memory_space<vmem>>, vector<1x8x1xf32>
    %50 = vector.shape_cast %49 : vector<1x8x1xf32> to vector<8x1xf32>
    %51 = vector.shape_cast %48 : vector<8x1xf32> to vector<1x8x1xf32>
    tpu.vector_store %arg6[%c0_12, %c0_13, %c0_14], %51 {strides = array<i32>} : memref<1x8x2xf32, #tpu.memory_space<vmem>>, vector<1x8x1xf32>,
    %52 = arith.mulf %43, %43 : vector<8x256xf32>
    %cst_15 = arith.constant dense<0.000000e+00> : vector<8xf32>
    %53 = vector.multi_reduction <add>, %52, %cst_15 [1] : vector<8x256xf32> to vector<8xf32>
    %54 = vector.shape_cast %53 : vector<8xf32> to vector<8x1xf32>
    %c0_16 = arith.constant 0 : index
    %c0_17 = arith.constant 0 : index
    %c1 = arith.constant 1 : index
    %55 = vector.load %arg6[%c0_16, %c0_17, %c1] : memref<1x8x2xf32, #tpu.memory_space<vmem>>, vector<1x8x1xf32>
    %56 = vector.shape_cast %55 : vector<1x8x1xf32> to vector<8x1xf32>
    %57 = vector.shape_cast %54 : vector<8x1xf32> to vector<1x8x1xf32>
    tpu.vector_store %arg6[%c0_16, %c0_17, %c1], %57 {strides = array<i32>} : memref<1x8x2xf32, #tpu.memory_space<vmem>>, vector<1x8x1xf32>,
    return
  }
  func.func @transform_0(%arg0: i32) -> (i32, i32, i32) {
    %c0_i32 = arith.constant 0 : i32
    %c0_i32_0 = arith.constant 0 : i32
    %c0_i32_1 = arith.constant 0 : i32
    return %arg0, %c0_i32, %c0_i32_0 : i32, i32, i32
  }
  func.func @transform_1(%arg0: i32) -> (i32, i32) {
    %c0_i32 = arith.constant 0 : i32
    %c0_i32_0 = arith.constant 0 : i32
    %c0_i32_1 = arith.constant 0 : i32
    return %c0_i32, %c0_i32_0 : i32, i32
  }
  func.func @transform_2(%arg0: i32) -> (i32, i32) {
    %c0_i32 = arith.constant 0 : i32
    %c0_i32_0 = arith.constant 0 : i32
    %c0_i32_1 = arith.constant 0 : i32
    return %c0_i32, %c0_i32_0 : i32, i32
  }
  func.func @transform_3(%arg0: i32) -> (i32, i32) {
    %c0_i32 = arith.constant 0 : i32
    %c0_i32_0 = arith.constant 0 : i32
    %c0_i32_1 = arith.constant 0 : i32
    return %c0_i32, %c0_i32_0 : i32, i32
  }
  func.func @transform_4(%arg0: i32) -> (i32, i32, i32) {
    %c0_i32 = arith.constant 0 : i32
    %c0_i32_0 = arith.constant 0 : i32
    %c0_i32_1 = arith.constant 0 : i32
    return %arg0, %c0_i32, %c0_i32_0 : i32, i32, i32
  }
  func.func @transform_5(%arg0: i32) -> (i32, i32, i32) {
    %c0_i32 = arith.constant 0 : i32
    %c0_i32_0 = arith.constant 0 : i32
    %c0_i32_1 = arith.constant 0 : i32
    return %arg0, %c0_i32, %c0_i32_0 : i32, i32, i32
  }
}

module attributes {stable_mosaic.version = 11 : i64} {
  func.func @_finalize_kernel(%arg0: i32, %arg1: memref<1x8x256xf32, #tpu.memory_space<vmem>>, %arg2: memref<8x1xf32, #tpu.memory_space<vmem>>, %arg3: memref<8x1xf32, #tpu.memory_space<vmem>>, %arg4: memref<1x8x256xf32, #tpu.memory_space<vmem>>) attributes {dimension_semantics = [#tpu.dimension_semantics<parallel>], iteration_bounds = array<i64: 2>, scalar_prefetch = 0 : i64, scratch_operands = 0 : i64, tpu.core_type = #tpu.core_type<tc>, window_params = [{transform_indices = @transform_0, window_bounds = array<i64: 1, 8, 256>}, {pipeline_mode = #tpu.pipeline_mode<synchronous>, transform_indices = @transform_1, window_bounds = array<i64: 8, 1>}, {pipeline_mode = #tpu.pipeline_mode<synchronous>, transform_indices = @transform_2, window_bounds = array<i64: 8, 1>}, {transform_indices = @transform_3, window_bounds = array<i64: 1, 8, 256>}]} {
    %c0 = arith.constant 0 : index
    %c0_0 = arith.constant 0 : index
    %c0_1 = arith.constant 0 : index
    %0 = vector.load %arg1[%c0, %c0_0, %c0_1] : memref<1x8x256xf32, #tpu.memory_space<vmem>>, vector<1x8x256xf32>
    %1 = vector.shape_cast %0 : vector<1x8x256xf32> to vector<8x256xf32>
    %c0_2 = arith.constant 0 : index
    %c0_3 = arith.constant 0 : index
    %2 = vector.load %arg2[%c0_2, %c0_3] : memref<8x1xf32, #tpu.memory_space<vmem>>, vector<8x1xf32>
    %3 = vector.broadcast %2 : vector<8x1xf32> to vector<8x256xf32>
    %4 = arith.mulf %1, %3 : vector<8x256xf32>
    %c0_4 = arith.constant 0 : index
    %c0_5 = arith.constant 0 : index
    %5 = vector.load %arg3[%c0_4, %c0_5] : memref<8x1xf32, #tpu.memory_space<vmem>>, vector<8x1xf32>
    %6 = vector.broadcast %5 : vector<8x1xf32> to vector<8x256xf32>
    %7 = arith.addf %4, %6 : vector<8x256xf32>
    %cst = arith.constant 5.000000e-01 : f32
    %8 = vector.broadcast %cst : f32 to vector<8x256xf32>
    %9 = arith.mulf %8, %7 : vector<8x256xf32>
    %cst_6 = arith.constant 0.707106769 : f32
    %10 = vector.broadcast %cst_6 : f32 to vector<8x256xf32>
    %11 = arith.mulf %7, %10 : vector<8x256xf32>
    %cst_7 = arith.constant 0.000000e+00 : f32
    %12 = vector.broadcast %cst_7 : f32 to vector<8x256xf32>
    %13 = arith.cmpf olt, %11, %12 : vector<8x256xf32>
    %cst_8 = arith.constant -1.000000e+00 : f32
    %cst_9 = arith.constant 1.000000e+00 : f32
    %14 = vector.broadcast %cst_8 : f32 to vector<8x256xf32>
    %15 = vector.broadcast %cst_9 : f32 to vector<8x256xf32>
    %16 = arith.select %13, %14, %15 : vector<8x256xi1>, vector<8x256xf32>
    %17 = math.absf %11 : vector<8x256xf32>
    %cst_10 = arith.constant 0.327591091 : f32
    %18 = vector.broadcast %cst_10 : f32 to vector<8x256xf32>
    %19 = arith.mulf %18, %17 : vector<8x256xf32>
    %cst_11 = arith.constant 1.000000e+00 : f32
    %20 = vector.broadcast %cst_11 : f32 to vector<8x256xf32>
    %21 = arith.addf %20, %19 : vector<8x256xf32>
    %22 = tpu.reciprocal %21 {approx = true} : vector<8x256xf32> -> vector<8x256xf32>
    %23 = arith.mulf %21, %22 : vector<8x256xf32>
    %cst_12 = arith.constant 2.000000e+00 : f32
    %24 = vector.broadcast %cst_12 : f32 to vector<8x256xf32>
    %25 = arith.subf %24, %23 : vector<8x256xf32>
    %26 = arith.mulf %22, %25 : vector<8x256xf32>
    %cst_13 = arith.constant 1.06140542 : f32
    %27 = vector.broadcast %cst_13 : f32 to vector<8x256xf32>
    %28 = arith.mulf %27, %26 : vector<8x256xf32>
    %cst_14 = arith.constant -1.45315206 : f32
    %29 = vector.broadcast %cst_14 : f32 to vector<8x256xf32>
    %30 = arith.addf %28, %29 : vector<8x256xf32>
    %31 = arith.mulf %30, %26 : vector<8x256xf32>
    %cst_15 = arith.constant 1.42141378 : f32
    %32 = vector.broadcast %cst_15 : f32 to vector<8x256xf32>
    %33 = arith.addf %31, %32 : vector<8x256xf32>
    %34 = arith.mulf %33, %26 : vector<8x256xf32>
    %cst_16 = arith.constant -0.284496725 : f32
    %35 = vector.broadcast %cst_16 : f32 to vector<8x256xf32>
    %36 = arith.addf %34, %35 : vector<8x256xf32>
    %37 = arith.mulf %36, %26 : vector<8x256xf32>
    %cst_17 = arith.constant 0.254829586 : f32
    %38 = vector.broadcast %cst_17 : f32 to vector<8x256xf32>
    %39 = arith.addf %37, %38 : vector<8x256xf32>
    %40 = arith.mulf %39, %26 : vector<8x256xf32>
    %cst_18 = arith.constant 0.000000e+00 : f32
    %41 = vector.broadcast %cst_18 : f32 to vector<8x256xf32>
    %42 = arith.subf %41, %17 : vector<8x256xf32>
    %43 = arith.mulf %42, %17 : vector<8x256xf32>
    %44 = math.exp %43 : vector<8x256xf32>
    %45 = arith.mulf %40, %44 : vector<8x256xf32>
    %cst_19 = arith.constant 1.000000e+00 : f32
    %46 = vector.broadcast %cst_19 : f32 to vector<8x256xf32>
    %47 = arith.subf %46, %45 : vector<8x256xf32>
    %48 = arith.mulf %16, %47 : vector<8x256xf32>
    %cst_20 = arith.constant 1.000000e+00 : f32
    %49 = vector.broadcast %cst_20 : f32 to vector<8x256xf32>
    %50 = arith.addf %49, %48 : vector<8x256xf32>
    %51 = arith.mulf %9, %50 : vector<8x256xf32>
    %c0_21 = arith.constant 0 : index
    %c0_22 = arith.constant 0 : index
    %c0_23 = arith.constant 0 : index
    %52 = vector.load %arg4[%c0_21, %c0_22, %c0_23] : memref<1x8x256xf32, #tpu.memory_space<vmem>>, vector<1x8x256xf32>
    %53 = vector.shape_cast %52 : vector<1x8x256xf32> to vector<8x256xf32>
    %54 = vector.shape_cast %51 : vector<8x256xf32> to vector<1x8x256xf32>
    tpu.vector_store %arg4[%c0_21, %c0_22, %c0_23], %54 {strides = array<i32>} : memref<1x8x256xf32, #tpu.memory_space<vmem>>, vector<1x8x256xf32>,
    return
  }
  func.func @transform_0(%arg0: i32) -> (i32, i32, i32) {
    %c0_i32 = arith.constant 0 : i32
    %c0_i32_0 = arith.constant 0 : i32
    %c0_i32_1 = arith.constant 0 : i32
    return %arg0, %c0_i32, %c0_i32_0 : i32, i32, i32
  }
  func.func @transform_1(%arg0: i32) -> (i32, i32) {
    %c0_i32 = arith.constant 0 : i32
    %c0_i32_0 = arith.constant 0 : i32
    %c0_i32_1 = arith.constant 0 : i32
    return %c0_i32, %c0_i32_0 : i32, i32
  }
  func.func @transform_2(%arg0: i32) -> (i32, i32) {
    %c0_i32 = arith.constant 0 : i32
    %c0_i32_0 = arith.constant 0 : i32
    %c0_i32_1 = arith.constant 0 : i32
    return %c0_i32, %c0_i32_0 : i32, i32
  }
  func.func @transform_3(%arg0: i32) -> (i32, i32, i32) {
    %c0_i32 = arith.constant 0 : i32
    %c0_i32_0 = arith.constant 0 : i32
    %c0_i32_1 = arith.constant 0 : i32
    return %arg0, %c0_i32, %c0_i32_0 : i32, i32, i32
  }
}

module attributes {stable_mosaic.version = 11 : i64} {
  func.func @_bn_gelu_conv_stats_kernel(%arg0: i32, %arg1: memref<1x8x256xf32, #tpu.memory_space<vmem>>, %arg2: memref<8x1xf32, #tpu.memory_space<vmem>>, %arg3: memref<8x1xf32, #tpu.memory_space<vmem>>, %arg4: memref<9x256xf32, #tpu.memory_space<vmem>>, %arg5: memref<8x72xf32, #tpu.memory_space<vmem>>, %arg6: memref<8x1xf32, #tpu.memory_space<vmem>>, %arg7: memref<1x8x256xf32, #tpu.memory_space<vmem>>, %arg8: memref<1x8x2xf32, #tpu.memory_space<vmem>>) attributes {dimension_semantics = [#tpu.dimension_semantics<parallel>], iteration_bounds = array<i64: 2>, scalar_prefetch = 0 : i64, scratch_operands = 0 : i64, tpu.core_type = #tpu.core_type<tc>, window_params = [{transform_indices = @transform_0, window_bounds = array<i64: 1, 8, 256>}, {pipeline_mode = #tpu.pipeline_mode<synchronous>, transform_indices = @transform_1, window_bounds = array<i64: 8, 1>}, {pipeline_mode = #tpu.pipeline_mode<synchronous>, transform_indices = @transform_2, window_bounds = array<i64: 8, 1>}, {pipeline_mode = #tpu.pipeline_mode<synchronous>, transform_indices = @transform_3, window_bounds = array<i64: 9, 256>}, {pipeline_mode = #tpu.pipeline_mode<synchronous>, transform_indices = @transform_4, window_bounds = array<i64: 8, 72>}, {pipeline_mode = #tpu.pipeline_mode<synchronous>, transform_indices = @transform_5, window_bounds = array<i64: 8, 1>}, {transform_indices = @transform_6, window_bounds = array<i64: 1, 8, 256>}, {transform_indices = @transform_7, window_bounds = array<i64: 1, 8, 2>}]} {
    %c0 = arith.constant 0 : index
    %c0_0 = arith.constant 0 : index
    %c0_1 = arith.constant 0 : index
    %0 = vector.load %arg1[%c0, %c0_0, %c0_1] : memref<1x8x256xf32, #tpu.memory_space<vmem>>, vector<1x8x256xf32>
    %1 = vector.shape_cast %0 : vector<1x8x256xf32> to vector<8x256xf32>
    %c0_2 = arith.constant 0 : index
    %c0_3 = arith.constant 0 : index
    %2 = vector.load %arg2[%c0_2, %c0_3] : memref<8x1xf32, #tpu.memory_space<vmem>>, vector<8x1xf32>
    %3 = vector.broadcast %2 : vector<8x1xf32> to vector<8x256xf32>
    %4 = arith.mulf %1, %3 : vector<8x256xf32>
    %c0_4 = arith.constant 0 : index
    %c0_5 = arith.constant 0 : index
    %5 = vector.load %arg3[%c0_4, %c0_5] : memref<8x1xf32, #tpu.memory_space<vmem>>, vector<8x1xf32>
    %6 = vector.broadcast %5 : vector<8x1xf32> to vector<8x256xf32>
    %7 = arith.addf %4, %6 : vector<8x256xf32>
    %cst = arith.constant 5.000000e-01 : f32
    %8 = vector.broadcast %cst : f32 to vector<8x256xf32>
    %9 = arith.mulf %8, %7 : vector<8x256xf32>
    %cst_6 = arith.constant 0.707106769 : f32
    %10 = vector.broadcast %cst_6 : f32 to vector<8x256xf32>
    %11 = arith.mulf %7, %10 : vector<8x256xf32>
    %cst_7 = arith.constant 0.000000e+00 : f32
    %12 = vector.broadcast %cst_7 : f32 to vector<8x256xf32>
    %13 = arith.cmpf olt, %11, %12 : vector<8x256xf32>
    %cst_8 = arith.constant -1.000000e+00 : f32
    %cst_9 = arith.constant 1.000000e+00 : f32
    %14 = vector.broadcast %cst_8 : f32 to vector<8x256xf32>
    %15 = vector.broadcast %cst_9 : f32 to vector<8x256xf32>
    %16 = arith.select %13, %14, %15 : vector<8x256xi1>, vector<8x256xf32>
    %17 = math.absf %11 : vector<8x256xf32>
    %cst_10 = arith.constant 0.327591091 : f32
    %18 = vector.broadcast %cst_10 : f32 to vector<8x256xf32>
    %19 = arith.mulf %18, %17 : vector<8x256xf32>
    %cst_11 = arith.constant 1.000000e+00 : f32
    %20 = vector.broadcast %cst_11 : f32 to vector<8x256xf32>
    %21 = arith.addf %20, %19 : vector<8x256xf32>
    %22 = tpu.reciprocal %21 {approx = true} : vector<8x256xf32> -> vector<8x256xf32>
    %23 = arith.mulf %21, %22 : vector<8x256xf32>
    %cst_12 = arith.constant 2.000000e+00 : f32
    %24 = vector.broadcast %cst_12 : f32 to vector<8x256xf32>
    %25 = arith.subf %24, %23 : vector<8x256xf32>
    %26 = arith.mulf %22, %25 : vector<8x256xf32>
    %cst_13 = arith.constant 1.06140542 : f32
    %27 = vector.broadcast %cst_13 : f32 to vector<8x256xf32>
    %28 = arith.mulf %27, %26 : vector<8x256xf32>
    %cst_14 = arith.constant -1.45315206 : f32
    %29 = vector.broadcast %cst_14 : f32 to vector<8x256xf32>
    %30 = arith.addf %28, %29 : vector<8x256xf32>
    %31 = arith.mulf %30, %26 : vector<8x256xf32>
    %cst_15 = arith.constant 1.42141378 : f32
    %32 = vector.broadcast %cst_15 : f32 to vector<8x256xf32>
    %33 = arith.addf %31, %32 : vector<8x256xf32>
    %34 = arith.mulf %33, %26 : vector<8x256xf32>
    %cst_16 = arith.constant -0.284496725 : f32
    %35 = vector.broadcast %cst_16 : f32 to vector<8x256xf32>
    %36 = arith.addf %34, %35 : vector<8x256xf32>
    %37 = arith.mulf %36, %26 : vector<8x256xf32>
    %cst_17 = arith.constant 0.254829586 : f32
    %38 = vector.broadcast %cst_17 : f32 to vector<8x256xf32>
    %39 = arith.addf %37, %38 : vector<8x256xf32>
    %40 = arith.mulf %39, %26 : vector<8x256xf32>
    %cst_18 = arith.constant 0.000000e+00 : f32
    %41 = vector.broadcast %cst_18 : f32 to vector<8x256xf32>
    %42 = arith.subf %41, %17 : vector<8x256xf32>
    %43 = arith.mulf %42, %17 : vector<8x256xf32>
    %44 = math.exp %43 : vector<8x256xf32>
    %45 = arith.mulf %40, %44 : vector<8x256xf32>
    %cst_19 = arith.constant 1.000000e+00 : f32
    %46 = vector.broadcast %cst_19 : f32 to vector<8x256xf32>
    %47 = arith.subf %46, %45 : vector<8x256xf32>
    %48 = arith.mulf %16, %47 : vector<8x256xf32>
    %cst_20 = arith.constant 1.000000e+00 : f32
    %49 = vector.broadcast %cst_20 : f32 to vector<8x256xf32>
    %50 = arith.addf %49, %48 : vector<8x256xf32>
    %51 = arith.mulf %9, %50 : vector<8x256xf32>
    %c0_21 = arith.constant 0 : index
    %c0_22 = arith.constant 0 : index
    %52 = vector.load %arg4[%c0_21, %c0_22] : memref<9x256xf32, #tpu.memory_space<vmem>>, vector<9x256xf32>
    %c17_i32 = arith.constant 17 : i32
    %53 = tpu.dynamic_rotate %51 by %c17_i32 dim 1 : vector<8x256xf32>, i32 -> vector<8x256xf32>
    %54 = vector.extract_strided_slice %52 {offsets = [0, 0], sizes = [1, 256], strides = [1, 1]} : vector<9x256xf32> to vector<1x256xf32>
    %55 = vector.broadcast %54 : vector<1x256xf32> to vector<8x256xf32>
    %56 = arith.mulf %53, %55 : vector<8x256xf32>
    %c16_i32 = arith.constant 16 : i32
    %57 = tpu.dynamic_rotate %51 by %c16_i32 dim 1 : vector<8x256xf32>, i32 -> vector<8x256xf32>
    %58 = vector.extract_strided_slice %52 {offsets = [1, 0], sizes = [1, 256], strides = [1, 1]} : vector<9x256xf32> to vector<1x256xf32>
    %59 = vector.broadcast %58 : vector<1x256xf32> to vector<8x256xf32>
    %60 = arith.mulf %57, %59 : vector<8x256xf32>
    %c15_i32 = arith.constant 15 : i32
    %61 = tpu.dynamic_rotate %51 by %c15_i32 dim 1 : vector<8x256xf32>, i32 -> vector<8x256xf32>
    %62 = vector.extract_strided_slice %52 {offsets = [2, 0], sizes = [1, 256], strides = [1, 1]} : vector<9x256xf32> to vector<1x256xf32>
    %63 = vector.broadcast %62 : vector<1x256xf32> to vector<8x256xf32>
    %64 = arith.mulf %61, %63 : vector<8x256xf32>
    %c1_i32 = arith.constant 1 : i32
    %65 = tpu.dynamic_rotate %51 by %c1_i32 dim 1 : vector<8x256xf32>, i32 -> vector<8x256xf32>
    %66 = vector.extract_strided_slice %52 {offsets = [3, 0], sizes = [1, 256], strides = [1, 1]} : vector<9x256xf32> to vector<1x256xf32>
    %67 = vector.broadcast %66 : vector<1x256xf32> to vector<8x256xf32>
    %68 = arith.mulf %65, %67 : vector<8x256xf32>
    %69 = vector.extract_strided_slice %52 {offsets = [4, 0], sizes = [1, 256], strides = [1, 1]} : vector<9x256xf32> to vector<1x256xf32>
    %70 = vector.broadcast %69 : vector<1x256xf32> to vector<8x256xf32>
    %71 = arith.mulf %51, %70 : vector<8x256xf32>
    %c255_i32 = arith.constant 255 : i32
    %72 = tpu.dynamic_rotate %51 by %c255_i32 dim 1 : vector<8x256xf32>, i32 -> vector<8x256xf32>
    %73 = vector.extract_strided_slice %52 {offsets = [5, 0], sizes = [1, 256], strides = [1, 1]} : vector<9x256xf32> to vector<1x256xf32>
    %74 = vector.broadcast %73 : vector<1x256xf32> to vector<8x256xf32>
    %75 = arith.mulf %72, %74 : vector<8x256xf32>
    %c241_i32 = arith.constant 241 : i32
    %76 = tpu.dynamic_rotate %51 by %c241_i32 dim 1 : vector<8x256xf32>, i32 -> vector<8x256xf32>
    %77 = vector.extract_strided_slice %52 {offsets = [6, 0], sizes = [1, 256], strides = [1, 1]} : vector<9x256xf32> to vector<1x256xf32>
    %78 = vector.broadcast %77 : vector<1x256xf32> to vector<8x256xf32>
    %79 = arith.mulf %76, %78 : vector<8x256xf32>
    %c240_i32 = arith.constant 240 : i32
    %80 = tpu.dynamic_rotate %51 by %c240_i32 dim 1 : vector<8x256xf32>, i32 -> vector<8x256xf32>
    %81 = vector.extract_strided_slice %52 {offsets = [7, 0], sizes = [1, 256], strides = [1, 1]} : vector<9x256xf32> to vector<1x256xf32>
    %82 = vector.broadcast %81 : vector<1x256xf32> to vector<8x256xf32>
    %83 = arith.mulf %80, %82 : vector<8x256xf32>
    %c239_i32 = arith.constant 239 : i32
    %84 = tpu.dynamic_rotate %51 by %c239_i32 dim 1 : vector<8x256xf32>, i32 -> vector<8x256xf32>
    %85 = vector.extract_strided_slice %52 {offsets = [8, 0], sizes = [1, 256], strides = [1, 1]} : vector<9x256xf32> to vector<1x256xf32>
    %86 = vector.broadcast %85 : vector<1x256xf32> to vector<8x256xf32>
    %87 = arith.mulf %84, %86 : vector<8x256xf32>
    %88 = tpu.concatenate %56, %60, %64, %68, %71, %75, %79, %83, %87 in 0 : vector<8x256xf32>, vector<8x256xf32>, vector<8x256xf32>, vector<8x256xf32>, vector<8x256xf32>, vector<8x256xf32>, vector<8x256xf32>, vector<8x256xf32>, vector<8x256xf32> -> vector<72x256xf32>
    %c0_23 = arith.constant 0 : index
    %c0_24 = arith.constant 0 : index
    %89 = vector.load %arg5[%c0_23, %c0_24] : memref<8x72xf32, #tpu.memory_space<vmem>>, vector<8x72xf32>
    %cst_25 = arith.constant dense<0.000000e+00> : vector<8x256xf32>
    %90 = tpu.matmul %89, %88, %cst_25 {dimension_numbers = #tpu.dot_dimension_numbers<[1], [0], [0], [1], [0, 0, 1, 1], [], []>} : vector<8x72xf32>, vector<72x256xf32>, vector<8x256xf32> -> vector<8x256xf32>
    %c0_26 = arith.constant 0 : index
    %c0_27 = arith.constant 0 : index
    %91 = vector.load %arg6[%c0_26, %c0_27] : memref<8x1xf32, #tpu.memory_space<vmem>>, vector<8x1xf32>
    %92 = vector.broadcast %91 : vector<8x1xf32> to vector<8x256xf32>
    %93 = arith.addf %90, %92 : vector<8x256xf32>
    %c0_28 = arith.constant 0 : index
    %c0_29 = arith.constant 0 : index
    %c0_30 = arith.constant 0 : index
    %94 = vector.load %arg7[%c0_28, %c0_29, %c0_30] : memref<1x8x256xf32, #tpu.memory_space<vmem>>, vector<1x8x256xf32>
    %95 = vector.shape_cast %94 : vector<1x8x256xf32> to vector<8x256xf32>
    %96 = vector.shape_cast %93 : vector<8x256xf32> to vector<1x8x256xf32>
    tpu.vector_store %arg7[%c0_28, %c0_29, %c0_30], %96 {strides = array<i32>} : memref<1x8x256xf32, #tpu.memory_space<vmem>>, vector<1x8x256xf32>,
    %cst_31 = arith.constant dense<0.000000e+00> : vector<8xf32>
    %97 = vector.multi_reduction <add>, %93, %cst_31 [1] : vector<8x256xf32> to vector<8xf32>
    %98 = vector.shape_cast %97 : vector<8xf32> to vector<8x1xf32>
    %c0_32 = arith.constant 0 : index
    %c0_33 = arith.constant 0 : index
    %c0_34 = arith.constant 0 : index
    %99 = vector.load %arg8[%c0_32, %c0_33, %c0_34] : memref<1x8x2xf32, #tpu.memory_space<vmem>>, vector<1x8x1xf32>
    %100 = vector.shape_cast %99 : vector<1x8x1xf32> to vector<8x1xf32>
    %101 = vector.shape_cast %98 : vector<8x1xf32> to vector<1x8x1xf32>
    tpu.vector_store %arg8[%c0_32, %c0_33, %c0_34], %101 {strides = array<i32>} : memref<1x8x2xf32, #tpu.memory_space<vmem>>, vector<1x8x1xf32>,
    %102 = arith.mulf %93, %93 : vector<8x256xf32>
    %cst_35 = arith.constant dense<0.000000e+00> : vector<8xf32>
    %103 = vector.multi_reduction <add>, %102, %cst_35 [1] : vector<8x256xf32> to vector<8xf32>
    %104 = vector.shape_cast %103 : vector<8xf32> to vector<8x1xf32>
    %c0_36 = arith.constant 0 : index
    %c0_37 = arith.constant 0 : index
    %c1 = arith.constant 1 : index
    %105 = vector.load %arg8[%c0_36, %c0_37, %c1] : memref<1x8x2xf32, #tpu.memory_space<vmem>>, vector<1x8x1xf32>
    %106 = vector.shape_cast %105 : vector<1x8x1xf32> to vector<8x1xf32>
    %107 = vector.shape_cast %104 : vector<8x1xf32> to vector<1x8x1xf32>
    tpu.vector_store %arg8[%c0_36, %c0_37, %c1], %107 {strides = array<i32>} : memref<1x8x2xf32, #tpu.memory_space<vmem>>, vector<1x8x1xf32>,
    return
  }
  func.func @transform_0(%arg0: i32) -> (i32, i32, i32) {
    %c0_i32 = arith.constant 0 : i32
    %c0_i32_0 = arith.constant 0 : i32
    %c0_i32_1 = arith.constant 0 : i32
    return %arg0, %c0_i32, %c0_i32_0 : i32, i32, i32
  }
  func.func @transform_1(%arg0: i32) -> (i32, i32) {
    %c0_i32 = arith.constant 0 : i32
    %c0_i32_0 = arith.constant 0 : i32
    %c0_i32_1 = arith.constant 0 : i32
    return %c0_i32, %c0_i32_0 : i32, i32
  }
  func.func @transform_2(%arg0: i32) -> (i32, i32) {
    %c0_i32 = arith.constant 0 : i32
    %c0_i32_0 = arith.constant 0 : i32
    %c0_i32_1 = arith.constant 0 : i32
    return %c0_i32, %c0_i32_0 : i32, i32
  }
  func.func @transform_3(%arg0: i32) -> (i32, i32) {
    %c0_i32 = arith.constant 0 : i32
    %c0_i32_0 = arith.constant 0 : i32
    %c0_i32_1 = arith.constant 0 : i32
    return %c0_i32, %c0_i32_0 : i32, i32
  }
  func.func @transform_4(%arg0: i32) -> (i32, i32) {
    %c0_i32 = arith.constant 0 : i32
    %c0_i32_0 = arith.constant 0 : i32
    %c0_i32_1 = arith.constant 0 : i32
    return %c0_i32, %c0_i32_0 : i32, i32
  }
  func.func @transform_5(%arg0: i32) -> (i32, i32) {
    %c0_i32 = arith.constant 0 : i32
    %c0_i32_0 = arith.constant 0 : i32
    %c0_i32_1 = arith.constant 0 : i32
    return %c0_i32, %c0_i32_0 : i32, i32
  }
  func.func @transform_6(%arg0: i32) -> (i32, i32, i32) {
    %c0_i32 = arith.constant 0 : i32
    %c0_i32_0 = arith.constant 0 : i32
    %c0_i32_1 = arith.constant 0 : i32
    return %arg0, %c0_i32, %c0_i32_0 : i32, i32, i32
  }
  func.func @transform_7(%arg0: i32) -> (i32, i32, i32) {
    %c0_i32 = arith.constant 0 : i32
    %c0_i32_0 = arith.constant 0 : i32
    %c0_i32_1 = arith.constant 0 : i32
    return %arg0, %c0_i32, %c0_i32_0 : i32, i32, i32
  }
}

</mosaic_0001>

<bundles_post_ra>
// kernel: residual_conv_block.5
= control target key start
LH: loop header
LB: loop body
LE: loop exit
PB: predicated region body
PF: predicated region fallthrough
CT: control target
= control target key end

     0   :  { %s366_s12 = smov 0   ;;  %s396_s0 = inlined_call_operand.vmem [shape: f32[2,8,256], index: 0, kind: input, shape index: {}]   ;;  %s397_s1 = inlined_call_operand.vmem [shape: f32[8,1], index: 1, kind: input, shape index: {}]   ;;  %s398_s2 = inlined_call_operand.vmem [shape: f32[8,1], index: 2, kind: input, shape index: {}]   ;;  %s399_s3 = inlined_call_operand.vmem [shape: f32[2,8,256], index: 3, kind: output, shape index: {}]  }
   0x1 LB: > { %s304_s13 = sadd.s32 4294967295, %s342_s12   ;;  %p308_p0 = scmp.ge.s32.totalorder %s342_s12, 1  ;;  %s342_s12 = sphi %s366_s12, %s13_s12  }
   0x2   : > { %p137_p1 = scmp.lt.s32.totalorder %s342_s12, 3 }
   0x4   : > { %p138_p2 = pnand %p308_p0, %p137_p1 }
   0x5   : > { %p161_p3 = scmp.lt.s32.totalorder (!%p138_p2), %s304_s13, 1 }
   0x6   : > { %141 = sbr.rel (%p138_p2) target bundleno = 189 (0xbd), region = 32 }
   0xb   : > { %v173_v0 = vld [vmem:[%s397_s1] sm:$0xff]  ;;  %v344_v1 = vmov 0   ;;  %s401_s13 = smov (!%p161_p3, %s304_s13), 1  ;;  %v345_v56 = vmov 1.0  }
   0xc   : > { %327 = vset.pattern.permute.xlu0 %v344_v1  ;;  %v181_v2 = vld [vmem:[%s398_s2] sm:$0xff]  ;;  %s315_s18 = sshll.u32 %s401_s13, 4 }
   0xd   : > { %176 = vperm.xlu0 %327, %v173_v0   ;;  %s165_s21 = scalar_lea.vmem %s396_s0, %s315_s18  ;;  %s170_s24 = scalar_lea.vmem %s399_s3, %s315_s18 }
   0xe   : > { %v171_v4 = vld [vmem:[%s165_s21] sm:$0xff]  ;;  %v172_v5 = vld [vmem:[%s165_s21 + $0x8] sm:$0xff] }
  0x15   : > { %184 = vperm.xlu0 %327, %v181_v2  }
  0x7f   : > { %v177_v3 = vpop.permute.xlu0 %176 }
  0x80   : > { %v179_v6 = vmul.f32 %v177_v3, %v171_v4  ;;  %v180_v7 = vmul.f32 %v177_v3, %v172_v5 }
  0x87   : > { %v185_v8 = vpop.permute.xlu0 %184 }
  0x88   : > { %v187_v9 = vadd.f32 %v185_v8, %v179_v6  ;;  %v188_v10 = vadd.f32 %v185_v8, %v180_v7 }
  0x8a   : > { %v191_v11 = vmul.f32 0.70710677, %v187_v9  ;;  %v192_v12 = vmul.f32 0.70710677, %v188_v10  ;;  %v189_v62 = vmul.f32 0.5, %v187_v9  ;;  %v190_v0 = vmul.f32 0.5, %v188_v10 }
  0x8c   : > { %v197_v13 = vand.u32 2147483647, %v191_v11  ;;  %v198_v14 = vand.u32 2147483647, %v192_v12  ;;  %vm193_vm0 = vcmp.lt.f32.partialorder %v191_v11, 0.0  ;;  %vm194_vm1 = vcmp.lt.f32.partialorder %v192_v12, 0.0 }
  0x8d   : > { %v195_v57 = vsel %vm193_vm0, -1.0, %v345_v56  ;;  %v196_v59 = vsel %vm194_vm1, -1.0, %v345_v56 }
  0x8e   : > { %v199_v15 = vmul.f32 0.3275911, %v197_v13  ;;  %v200_v16 = vmul.f32 0.3275911, %v198_v14  ;;  %v229_v27 = vsub.f32 0.0, %v197_v13  ;;  %v230_v29 = vsub.f32 0.0, %v198_v14 }
  0x90   : > { %v201_v17 = vadd.f32 1.0, %v199_v15  ;;  %v202_v18 = vadd.f32 1.0, %v200_v16  ;;  %v231_v33 = vmul.f32 %v229_v27, %v197_v13  ;;  %v232_v35 = vmul.f32 %v230_v29, %v198_v14 }
  0x92   : > { %328 = vrcp.f32 %v201_v17  ;;  %v233_v39 = vmul.f32 1.442695, %v231_v33  ;;  %v235_v41 = vmul.f32 1.442695, %v232_v35 }
  0x93   : > { %330 = vrcp.f32 %v202_v18 }
  0x94   : > { %332 = vpow2.f32 %v233_v39 }
  0x95   : > { %334 = vpow2.f32 %v235_v41 }
  0x98   : > { %v329_v19 = vpop.eup %328 }
  0x99   : > { %v331_v20 = vpop.eup %330  ;;  %v205_v21 = vmul.f32 %v329_v19, %v201_v17 }
  0x9a   : > { %v206_v22 = vmul.f32 %v331_v20, %v202_v18  ;;  %v333_v50 = vpop.eup %332 }
  0x9b   : > { %v207_v23 = vsub.f32 2.0, %v205_v21  ;;  %v335_v52 = vpop.eup %334 }
  0x9c   : > { %v208_v24 = vsub.f32 2.0, %v206_v22 }
  0x9d   : > { %v209_v25 = vmul.f32 %v329_v19, %v207_v23 }
  0x9e   : > { %v210_v26 = vmul.f32 %v331_v20, %v208_v24 }
  0x9f   : > { %v211_v28 = vmul.f32 1.0614054, %v209_v25 }
  0xa0   : > { %v212_v30 = vmul.f32 1.0614054, %v210_v26 }
  0xa1   : > { %v213_v31 = vadd.f32 -1.4531521, %v211_v28 }
  0xa2   : > { %v214_v32 = vadd.f32 -1.4531521, %v212_v30 }
  0xa3   : > { %v215_v34 = vmul.f32 %v213_v31, %v209_v25 }
  0xa4   : > { %v216_v36 = vmul.f32 %v214_v32, %v210_v26 }
  0xa5   : > { %v217_v37 = vadd.f32 1.4214138, %v215_v34 }
  0xa6   : > { %v218_v38 = vadd.f32 1.4214138, %v216_v36 }
  0xa7   : > { %v219_v40 = vmul.f32 %v217_v37, %v209_v25 }
  0xa8   : > { %v220_v42 = vmul.f32 %v218_v38, %v210_v26 }
  0xa9   : > { %v221_v43 = vadd.f32 -0.28449672, %v219_v40 }
  0xaa   : > { %v222_v44 = vadd.f32 -0.28449672, %v220_v42 }
  0xab   : > { %v223_v45 = vmul.f32 %v221_v43, %v209_v25 }
  0xac   : > { %v224_v46 = vmul.f32 %v222_v44, %v210_v26 }
  0xad   : > { %v225_v47 = vadd.f32 0.2548296, %v223_v45 }
  0xae   : > { %v226_v48 = vadd.f32 0.2548296, %v224_v46 }
  0xaf   : > { %v227_v49 = vmul.f32 %v225_v47, %v209_v25 }
  0xb0   : > { %v228_v51 = vmul.f32 %v226_v48, %v210_v26 }
  0xb1   : > { %v237_v53 = vmul.f32 %v333_v50, %v227_v49 }
  0xb2   : > { %v238_v54 = vmul.f32 %v335_v52, %v228_v51 }
  0xb3   : > { %v239_v55 = vsub.f32 1.0, %v237_v53 }
  0xb4   : > { %v240_v58 = vsub.f32 1.0, %v238_v54 }
  0xb5   : > { %v241_v60 = vmul.f32 %v239_v55, %v195_v57 }
  0xb6   : > { %v242_v61 = vmul.f32 %v240_v58, %v196_v59 }
  0xb7   : > { %v243_v63 = vadd.f32 1.0, %v241_v60 }
  0xb8   : > { %v244_v1 = vadd.f32 1.0, %v242_v61 }
  0xb9   : > { %v245_v2 = vmul.f32 %v243_v63, %v189_v62 }
  0xba   : > { %v246_v3 = vmul.f32 %v244_v1, %v190_v0 }
  0xbb   : > { %247 = vst [vmem:[%s170_s24] sm:$0xff] %v245_v2 }
  0xbc   : > { %248 = vst [vmem:[%s170_s24 + $0x8] sm:$0xff] %v246_v3 }
  0xbd PF: > { %s13_s12 = sadd.s32 1, %s342_s12  }
  0xbe   : > { %p10_p4 = scmp.ge.s32.totalorder %s13_s12, 4  }
  0xc0   :  { %12 = sbr.rel (!%p10_p4) target bundleno = 1 (0x1), region = 62 }

// kernel: residual_conv_block.3
= control target key start
LH: loop header
LB: loop body
LE: loop exit
PB: predicated region body
PF: predicated region fallthrough
CT: control target
= control target key end

     0   :  { %s662_s18 = smov 0   ;;  %s767_s0 = inlined_call_operand.vmem [shape: f32[2,4,256], index: 0, kind: input, shape index: {}]   ;;  %s768_s1 = inlined_call_operand.vmem [shape: f32[9,256], index: 1, kind: input, shape index: {}]   ;;  %s769_s2 = inlined_call_operand.vmem [shape: f32[8,36], index: 2, kind: input, shape index: {}]   ;;  %s770_s3 = inlined_call_operand.vmem [shape: f32[8,1], index: 3, kind: input, shape index: {}]   ;;  %s771_s4 = inlined_call_operand.vmem [shape: f32[2,8,256], index: 4, kind: output, shape index: {0}]   ;;  %s772_s5 = inlined_call_operand.vmem [shape: f32[2,8,2], index: 5, kind: output, shape index: {1}]  }
   0x1 LB: > { %s576_s19 = sadd.s32 4294967295, %s621_s18   ;;  %p580_p0 = scmp.ge.s32.totalorder %s621_s18, 1  ;;  %s621_s18 = sphi %s662_s18, %s16_s18  }
   0x2   : > { %p190_p1 = scmp.lt.s32.totalorder %s621_s18, 3 }
   0x4   : > { %p191_p2 = pnand %p580_p0, %p190_p1 }
   0x5   : > { %p222_p3 = scmp.lt.s32.totalorder (!%p191_p2), %s576_s19, 1  ;;  %s623_s24 = smov (!%p191_p2), 16  }
   0x6   : > { %194 = sbr.rel (%p191_p2) target bundleno = 466 (0x1d2), region = 36  ;;  %s624_s25 = smov (!%p191_p2), 15  }
   0x7   : > { %s625_s26 = smov (!%p191_p2), 1   ;;  %s626_s27 = smov (!%p191_p2), 127  }
   0x8   : > { %s627_s28 = smov (!%p191_p2), 113   ;;  %s628_s29 = smov (!%p191_p2), 112  }
   0x9   : > { %s629_s30 = smov (!%p191_p2), 17   ;;  %s630_s6 = smov (!%p191_p2), 111  }
   0xb   : > { %s774_s19 = smov (!%p222_p3, %s576_s19), 1  ;;  %v683_v17 = vld [vmem:[%s768_s1 + $0x8] sm:$0xff]  ;;  %v689_v19 = vld [vmem:[%s768_s1] sm:$0xff]  ;;  %vm313_vm0 = vcmask 1043456   ;;  %v251_v34 = vlaneseq  ;;  %v631_v35 = vmov 0   ;;  %vm426_vm9 = vcmask 293888  }
   0xc   : > { %s592_s20 = sshll.u32 %s774_s19, 3  ;;  %v309_v18 = vperm.slane %v683_v17, 4  ;;  %v308_v20 = vperm.slane %v689_v19, 4  ;;  %v420_v33 = vld [vmem:[%s770_s3] sm:$0xff]  ;;  %611 = vset.pattern.permute.xlu1 %v631_v35  ;;  %612 = vset.pattern.permute.xlu0 %v631_v35  ;;  %v361_v39 = vperm.slane %v689_v19, 7  ;;  %v362_v40 = vperm.slane %v683_v17, 7 }
   0xd   : > { %s226_s23 = scalar_lea.vmem %s767_s0, %s592_s20  ;;  %v698_v36 = vand.u32 127, %v251_v34  ;;  %v329_v41 = vperm.slane %v689_v19, 5  ;;  %v330_v45 = vperm.slane %v683_v17, 5  ;;  %v272_v47 = vperm.slane %v689_v19, 1  ;;  %v613_v54 = vld [vmem:[%s768_s1 + $0x10] ss:$0 sm:$0xff] }
   0xe   : > { %v236_v0 = vld [vmem:[%s226_s23] sm:$0xff]  ;;  %v312_v21 = vrot.slane %v309_v18, 4  ;;  %v273_v48 = vperm.slane %v683_v17, 1  ;;  %v304_v52 = vperm.slane %v689_v19, 3  ;;  %v614_v55 = vld [vmem:[%s768_s1 + $0x18] ss:$0 sm:$0xff] }
   0xf   : > { %242 = vst [vmem:[#allocation1] ss:$2 sm:$0xff] %v236_v0  ;;  %vm358_vm1 = vcmp.lt.s32.totalorder %v698_v36, 112  ;;  %vm326_vm2 = vcmp.lt.s32.totalorder %v698_v36, 127  ;;  %vm301_vm3 = vcmp.lt.s32.totalorder %v698_v36, 1  ;;  %vm342_vm4 = vcmp.lt.s32.totalorder %v698_v36, 113 }
  0x10   : > { %v314_v23 = vsel %vm313_vm0, %v308_v20, %v312_v21  ;;  %vm374_vm5 = vcmp.lt.s32.totalorder %v698_v36, 111  ;;  %v305_v56 = vperm.slane %v683_v17, 3  ;;  %v345_v57 = vperm.slane %v689_v19, 6  ;;  %s593_s22 = sshll.u32 %s774_s19, 4 }
  0x11   : > { %v316_v24 = vmul.f32 %v314_v23, %v236_v0  ;;  %v346_v58 = vperm.slane %v683_v17, 6  ;;  %vm269_vm6 = vcmp.lt.s32.totalorder %v698_v36, 16  ;;  %vm253_vm7 = vcmp.lt.s32.totalorder %v698_v36, 17 }
  0x12   : > { %v256_v21 = vperm.slane %v689_v19, 0  ;;  %vm285_vm8 = vcmp.lt.s32.totalorder %v698_v36, 15  ;;  %vm481_vm10 = vcmask 7168   ;;  %vm488_vm11 = vcmask 15368  }
  0x16   : > { %v243_v1 = vld.sshfl [vmem:[#allocation1] sm:$0xff pattern:$0x75316420]  ;;  %v244_v2 = vld.sshfl [vmem:[#allocation1 + $0x8] sm:$0xff pattern:$0x75316420] }
  0x17   : > { %260 = vst [vmem:[#allocation1] ss:$2 sm:$0xff] %v236_v0 }
  0x1e   : > { %v261_v3 = vld.sshfl [vmem:[#allocation1] sm:$0xff pattern:$0x75316420]  ;;  %v262_v4 = vld.sshfl [vmem:[#allocation1 + $0x8] sm:$0xff pattern:$0x75316420] }
  0x1f   : > { %276 = vst [vmem:[#allocation1] ss:$2 sm:$0xff] %v236_v0  ;;  %265 = vrot.lane.b32.xlu1 %v261_v3, %s623_s24  ;;  %267 = vrot.lane.b32.xlu2 %v262_v4, %s623_s24 }
  0x26   : > { %v277_v5 = vld.sshfl [vmem:[#allocation1] sm:$0xff pattern:$0x75316420]  ;;  %v278_v6 = vld.sshfl [vmem:[#allocation1 + $0x8] sm:$0xff pattern:$0x75316420] }
  0x27   : > { %281 = vrot.lane.b32.xlu0 %v277_v5, %s624_s25  ;;  %292 = vst [vmem:[#allocation1] ss:$2 sm:$0xff] %v236_v0 }
  0x2e   : > { %v294_v7 = vld.sshfl [vmem:[#allocation1 + $0x8] sm:$0xff pattern:$0x75316420]  ;;  %v293_v8 = vld.sshfl [vmem:[#allocation1] sm:$0xff pattern:$0x75316420] }
  0x2f   : > { %299 = vrot.lane.b32.xlu0 %v294_v7, %s625_s26  ;;  %317 = vst [vmem:[#allocation1] ss:$2 sm:$0xff] %v236_v0  ;;  %297 = vrot.lane.b32.xlu2 %v293_v8, %s625_s26 }
  0x36   : > { %v318_v9 = vld.sshfl [vmem:[#allocation1] sm:$0xff pattern:$0x75316420]  ;;  %v319_v10 = vld.sshfl [vmem:[#allocation1 + $0x8] sm:$0xff pattern:$0x75316420] }
  0x37   : > { %333 = vst [vmem:[#allocation1] ss:$2 sm:$0xff] %v236_v0  ;;  %322 = vrot.lane.b32.xlu2 %v318_v9, %s626_s27 }
  0x3e   : > { %v334_v11 = vld.sshfl [vmem:[#allocation1] sm:$0xff pattern:$0x75316420]  ;;  %v335_v12 = vld.sshfl [vmem:[#allocation1 + $0x8] sm:$0xff pattern:$0x75316420] }
  0x3f   : > { %338 = vrot.lane.b32.xlu0 %v334_v11, %s627_s28  ;;  %340 = vrot.lane.b32.xlu1 %v335_v12, %s627_s28  ;;  %349 = vst [vmem:[#allocation1] ss:$2 sm:$0xff] %v236_v0  ;;  %s235_s28 = scalar_lea.vmem %s772_s5, %s592_s20 }
  0x40   : > { %324 = vrot.lane.b32.xlu2 %v319_v10, %s626_s27 }
  0x46   : > { %v350_v13 = vld.sshfl [vmem:[#allocation1] sm:$0xff pattern:$0x75316420]  ;;  %v351_v14 = vld.sshfl [vmem:[#allocation1 + $0x8] sm:$0xff pattern:$0x75316420] }
  0x47   : > { %354 = vrot.lane.b32.xlu0 %v350_v13, %s628_s29  ;;  %365 = vst [vmem:[#allocation1] ss:$2 sm:$0xff] %v236_v0 }
  0x48   : > { %247 = vrot.lane.b32.xlu2 %v243_v1, %s629_s30 }
  0x4e   : > { %v366_v15 = vld.sshfl [vmem:[#allocation1] sm:$0xff pattern:$0x75316420]  ;;  %v367_v16 = vld.sshfl [vmem:[#allocation1 + $0x8] sm:$0xff pattern:$0x75316420] }
  0x4f   : > { %356 = vrot.lane.b32.xlu0 %v351_v14, %s628_s29  ;;  %370 = vrot.lane.b32.xlu1 %v366_v15, %s630_s6  ;;  %394 = vst [vmem:[#allocation1] ss:$2 sm:$0xff] %v316_v24 }
  0x56   : > { %v396_v18 = vld.sshfl [vmem:[#allocation1 + $0x8] sm:$0xff pattern:$0x75316420] }
  0x57   : > { %249 = vrot.lane.b32.xlu0 %v244_v2, %s629_s30  ;;  %372 = vrot.lane.b32.xlu1 %v367_v16, %s630_s6  ;;  %v395_v16 = vld.sshfl [vmem:[#allocation1] sm:$0xff pattern:$0x75316420] }
  0x5f   : > { %283 = vrot.lane.b32.xlu1 %v278_v6, %s624_s25  ;;  %s231_s25 = scalar_lea.vmem %s771_s4, %s593_s22 }
  0x67   : > { %423 = vperm.xlu1 %611, %v420_v33  }
  0x79   : > { %v268_v25 = vpop.permute.xlu2 %267 }
  0x89   : > { %v298_v28 = vpop.permute.xlu2 %297 }
  0x91   : > { %v266_v27 = vpop.permute.xlu1 %265  ;;  %v323_v31 = vpop.permute.xlu2 %322 }
  0x92   : > { %v270_v11 = vsel %vm269_vm6, %v266_v27, %v268_v25  ;;  %v271_v12 = vsel %vm269_vm6, %v268_v25, %v266_v27  ;;  %v288_v25 = vperm.slane %v689_v19, 2  ;;  %v289_v27 = vperm.slane %v683_v17, 2 }
  0x93   : > { %v275_v33 = vmul.f32 %v273_v48, %v270_v11 }
  0x99   : > { %v692_v22 = vpop.permute.xlu0 %281 }
  0x9a   : > { %v325_v42 = vpop.permute.xlu2 %324 }
  0x9b   : > { %v327_v46 = vsel %vm326_vm2, %v323_v31, %v325_v42  ;;  %v328_v49 = vsel %vm326_vm2, %v325_v42, %v323_v31  ;;  %v384_v42 = vrot.slane %v275_v33, 4 }
  0x9c   : > { %v331_v53 = vmul.f32 %v329_v41, %v327_v46  ;;  %v332_v59 = vmul.f32 %v330_v45, %v328_v49  ;;  %v419_v45 = vld [vmem:[%s769_s2] sm:$0xff] }
  0x9e   : > { %v401_v5 = vrot.slane %v331_v53, 4  ;;  %v402_v10 = vrot.slane %v332_v59, 4 }
  0xa0   : > { %v416_v31 = vsel %vm313_vm0, %v396_v18, %v402_v10 }
  0xa1   : > { %v300_v26 = vpop.permute.xlu0 %299 }
  0xa2   : > { %v303_v60 = vsel %vm301_vm3, %v300_v26, %v298_v28  ;;  %v302_v4 = vsel %vm301_vm3, %v298_v28, %v300_v26  ;;  %v248_v14 = vpop.permute.xlu2 %247  ;;  %v257_v26 = vperm.slane %v683_v17, 0 }
  0xa3   : > { %v306_v13 = vmul.f32 %v304_v52, %v303_v60  ;;  %v307_v20 = vmul.f32 %v305_v56, %v302_v4 }
  0xa5   : > { %v389_v35 = vrot.slane %v306_v13, 4 }
  0xb1   : > { %v339_v29 = vpop.permute.xlu0 %338  ;;  %v341_v30 = vpop.permute.xlu1 %340 }
  0xb2   : > { %v343_v61 = vsel %vm342_vm4, %v339_v29, %v341_v30  ;;  %v344_v62 = vsel %vm342_vm4, %v341_v30, %v339_v29  ;;  %v415_v30 = vsel %vm313_vm0, %v395_v16, %v401_v5 }
  0xb3   : > { %v347_v8 = vmul.f32 %v345_v57, %v343_v61  ;;  %v348_v9 = vmul.f32 %v346_v58, %v344_v62 }
  0xb9   : > { %v355_v32 = vpop.permute.xlu0 %354 }
  0xc1   : > { %v357_v37 = vpop.permute.xlu0 %356  ;;  %v371_v38 = vpop.permute.xlu1 %370 }
  0xc2   : > { %v359_v43 = vsel %vm358_vm1, %v355_v32, %v357_v37  ;;  %v360_v44 = vsel %vm358_vm1, %v357_v37, %v355_v32  ;;  %v274_v32 = vmul.f32 %v272_v47, %v271_v12  ;;  %v390_v37 = vrot.slane %v307_v20, 4 }
  0xc3   : > { %v363_v50 = vmul.f32 %v361_v39, %v359_v43  ;;  %v364_v51 = vmul.f32 %v362_v40, %v360_v44 }
  0xc4   : > { %v383_v41 = vrot.slane %v274_v32, 4 }
  0xc5   : > { %v407_v0 = vrot.slane %v363_v50, 4  ;;  %v408_v1 = vrot.slane %v364_v51, 4 }
  0xc7   : > { %v417_v23 = vsel %vm313_vm0, %v347_v8, %v407_v0  ;;  %v418_v24 = vsel %vm313_vm0, %v348_v9, %v408_v1 }
  0xc9   : > { %v373_v63 = vpop.permute.xlu1 %372  ;;  %v250_v15 = vpop.permute.xlu0 %249 }
  0xca   : > { %v375_v2 = vsel %vm374_vm5, %v371_v38, %v373_v63  ;;  %v376_v3 = vsel %vm374_vm5, %v373_v63, %v371_v38  ;;  %v254_v28 = vsel %vm253_vm7, %v248_v14, %v250_v15  ;;  %v255_v29 = vsel %vm253_vm7, %v250_v15, %v248_v14 }
  0xcb   : > { %v379_v6 = vmul.f32 %v613_v54, %v375_v2  ;;  %v380_v7 = vmul.f32 %v614_v55, %v376_v3  ;;  %v258_v38 = vmul.f32 %v256_v21, %v255_v29  ;;  %v259_v39 = vmul.f32 %v257_v26, %v254_v28 }
  0xcd   : > { %586 = vmatpush.msk.msra.mxu0 %vm313_vm0, %v379_v6  ;;  %588 = vmatpush.msk.msra.mxu1 %vm313_vm0, %v380_v7  ;;  %v412_v46 = vsel %vm313_vm0, %v259_v39, %v384_v42 }
  0xcf   : > { %448 = vmatpush.msra.mxu0 %v417_v23  ;;  %468 = vmatpush.msra.mxu1 %v418_v24 }
  0xd1   : > { %v284_v34 = vpop.permute.xlu1 %283  ;;  %449 = vmatpush.msra.mxu0 %v415_v30  ;;  %469 = vmatpush.msra.mxu1 %v416_v31 }
  0xd2   : > { %v286_v19 = vsel %vm285_vm8, %v692_v22, %v284_v34  ;;  %v287_v17 = vsel %vm285_vm8, %v284_v34, %v692_v22  ;;  %v411_v22 = vsel %vm313_vm0, %v258_v38, %v383_v41 }
  0xd3   : > { %v290_v40 = vmul.f32 %v288_v25, %v287_v17  ;;  %v291_v36 = vmul.f32 %v289_v27, %v286_v19 }
  0xd5   : > { %v413_v43 = vsel %vm313_vm0, %v290_v40, %v389_v35  ;;  %v414_v44 = vsel %vm313_vm0, %v291_v36, %v390_v37 }
  0xd6   : > { %450 = vmatpush.msra.mxu0 %v413_v43  ;;  %470 = vmatpush.msra.mxu1 %v414_v44 }
  0xd8   : > { %451 = vmatpush.msra.mxu0 %v411_v22  ;;  %471 = vmatpush.msra.mxu1 %v412_v46 }
  0xd9   : > { %587 = vmatmul.msk.f32.vlgmr.msra.gmra.mxu0 %vm426_vm9, %v419_v45  ;;  %589 = vmatmul.msk.f32.vlgmr.msra.gmra.mxu1 %vm426_vm9, %v419_v45  ;;  %v424_v47 = vpop.permute.xlu1 %423 }
 0x156   : > { %v453_v48 = vpop.f32.mrf.mxu0  ;;  %v473_v49 = vpop.f32.mrf.mxu1 }
 0x157   : > { %v454_v50 = vadd.f32 %v453_v48, %v424_v47  ;;  %v474_v51 = vadd.f32 %v473_v49, %v424_v47 }
 0x159   : > { %476 = vst [vmem:[%s231_s25] sm:$0xff] %v454_v50  ;;  %v478_v52 = vadd.f32 %v474_v51, %v454_v50  ;;  %v483_v53 = vmul.f32 %v454_v50, %v454_v50  ;;  %v484_v54 = vmul.f32 %v474_v51, %v474_v51 }
 0x15a   : > { %477 = vst [vmem:[%s231_s25 + $0x8] sm:$0xff] %v474_v51 }
 0x15b   : > { %479 = vadd.xlane.f32.xlu2 %v478_v52  ;;  %v485_v55 = vadd.f32 %v484_v54, %v483_v53 }
 0x15d   : > { %486 = vadd.xlane.f32.xlu0 %v485_v55 }
 0x1ce   : > { %v480_v56 = vpop.xlane.xlu2 %479 }
 0x1cf   : > { %482 = vst.msk [vmem:[%s235_s28] sm:$0xff] %vm481_vm10, %v480_v56 }
 0x1d0   : > { %v487_v57 = vpop.xlane.xlu0 %486 }
 0x1d1   : > { %489 = vst.msk [vmem:[%s235_s28] sm:$0xff] %vm488_vm11, %v487_v57 }
 0x1d2 PF: > { %s16_s18 = sadd.s32 1, %s621_s18  }
 0x1d3   : > { %p13_p4 = scmp.ge.s32.totalorder %s16_s18, 4  }
 0x1d5   :  { %15 = sbr.rel (!%p13_p4) target bundleno = 1 (0x1), region = 78 }

// kernel: residual_conv_block.4
= control target key start
LH: loop header
LB: loop body
LE: loop exit
PB: predicated region body
PF: predicated region fallthrough
CT: control target
= control target key end

     0   :  { %s718_s24 = smov 0   ;;  %s826_s0 = inlined_call_operand.vmem [shape: f32[2,8,256], index: 0, kind: input, shape index: {}]   ;;  %s827_s1 = inlined_call_operand.vmem [shape: f32[8,1], index: 1, kind: input, shape index: {}]   ;;  %s828_s2 = inlined_call_operand.vmem [shape: f32[8,1], index: 2, kind: input, shape index: {}]   ;;  %s829_s3 = inlined_call_operand.vmem [shape: f32[9,256], index: 3, kind: input, shape index: {}]   ;;  %s830_s4 = inlined_call_operand.vmem [shape: f32[8,72], index: 4, kind: input, shape index: {}]   ;;  %s831_s5 = inlined_call_operand.vmem [shape: f32[8,1], index: 5, kind: input, shape index: {}]   ;;  %s832_s6 = inlined_call_operand.vmem [shape: f32[2,8,256], index: 6, kind: output, shape index: {0}]   ;;  %s833_s7 = inlined_call_operand.vmem [shape: f32[2,8,2], index: 7, kind: output, shape index: {1}]  }
   0x1 LB: > { %s615_s25 = sadd.s32 4294967295, %s666_s24   ;;  %p619_p0 = scmp.ge.s32.totalorder %s666_s24, 1  ;;  %s666_s24 = sphi %s718_s24, %s18_s24  }
   0x2   : > { %p240_p1 = scmp.lt.s32.totalorder %s666_s24, 3 }
   0x4   : > { %p241_p2 = pnand %p619_p0, %p240_p1 }
   0x5   : > { %p276_p3 = scmp.lt.s32.totalorder (!%p241_p2), %s615_s25, 1  ;;  %s670_s11 = smov (!%p241_p2), 113  }
   0x6   : > { %244 = sbr.rel (%p241_p2) target bundleno = 596 (0x254), region = 44  ;;  %s671_s12 = smov (!%p241_p2), 112  }
   0x7   : > { %s672_s13 = smov (!%p241_p2), 111   ;;  %s673_s14 = smov (!%p241_p2), 127  }
   0x8   : > { %s674_s15 = smov (!%p241_p2), 15   ;;  %s675_s16 = smov (!%p241_p2), 16  }
   0x9   : > { %s676_s17 = smov (!%p241_p2), 1   ;;  %s677_s20 = smov (!%p241_p2), 17  }
   0xb   : > { %v292_v0 = vld [vmem:[%s827_s1] sm:$0xff]  ;;  %v668_v1 = vmov 0   ;;  %s835_s25 = smov (!%p276_p3, %s615_s25), 1  ;;  %v669_v56 = vmov 1.0   ;;  %vm471_vm10 = vcmask 588800   ;;  %vm520_vm11 = vcmask 7168  }
   0xc   : > { %649 = vset.pattern.permute.xlu0 %v668_v1  ;;  %v300_v2 = vld [vmem:[%s828_s2] sm:$0xff]  ;;  %s629_s30 = sshll.u32 %s835_s25, 4  ;;  %vm527_vm12 = vcmask 15368  }
   0xd   : > { %295 = vperm.xlu0 %649, %v292_v0   ;;  %s280_s10 = scalar_lea.vmem %s826_s0, %s629_s30 }
   0xe   : > { %v290_v4 = vld [vmem:[%s280_s10] sm:$0xff]  ;;  %v291_v5 = vld [vmem:[%s280_s10 + $0x8] sm:$0xff] }
  0x15   : > { %303 = vperm.xlu0 %649, %v300_v2  }
  0x7f   : > { %v296_v3 = vpop.permute.xlu0 %295 }
  0x80   : > { %v298_v6 = vmul.f32 %v296_v3, %v290_v4  ;;  %v299_v7 = vmul.f32 %v296_v3, %v291_v5  ;;  %v465_v4 = vld [vmem:[%s831_s5] sm:$0xff] }
  0x87   : > { %v304_v8 = vpop.permute.xlu0 %303 }
  0x88   : > { %v306_v9 = vadd.f32 %v304_v8, %v298_v6  ;;  %v740_v10 = vadd.f32 %v304_v8, %v299_v7  ;;  %v374_v6 = vlaneseq }
  0x8a   : > { %v310_v11 = vmul.f32 0.70710677, %v306_v9  ;;  %v311_v12 = vmul.f32 0.70710677, %v740_v10  ;;  %v308_v60 = vmul.f32 0.5, %v306_v9  ;;  %v309_v2 = vmul.f32 0.5, %v740_v10 }
  0x8b   : > { %v767_v10 = vand.u32 127, %v374_v6 }
  0x8c   : > { %v316_v13 = vand.u32 2147483647, %v310_v11  ;;  %v317_v14 = vand.u32 2147483647, %v311_v12  ;;  %vm312_vm0 = vcmp.lt.f32.partialorder %v310_v11, 0.0  ;;  %vm313_vm1 = vcmp.lt.f32.partialorder %v311_v12, 0.0 }
  0x8d   : > { %v314_v57 = vsel %vm312_vm0, -1.0, %v669_v56  ;;  %v315_v62 = vsel %vm313_vm1, -1.0, %v669_v56  ;;  %vm446_vm2 = vcmp.lt.s32.totalorder %v767_v10, 112  ;;  %vm457_vm3 = vcmp.lt.s32.totalorder %v767_v10, 111  ;;  %v650_v11 = vld [vmem:[%s829_s3 + $0x10] ss:$0 sm:$0xff] }
  0x8e   : > { %v318_v15 = vmul.f32 0.3275911, %v316_v13  ;;  %v319_v16 = vmul.f32 0.3275911, %v317_v14  ;;  %v348_v27 = vsub.f32 0.0, %v316_v13  ;;  %v349_v29 = vsub.f32 0.0, %v317_v14 }
  0x8f   : > { %v651_v12 = vld [vmem:[%s829_s3 + $0x18] ss:$0 sm:$0xff]  ;;  %vm424_vm4 = vcmp.lt.s32.totalorder %v767_v10, 127  ;;  %vm435_vm5 = vcmp.lt.s32.totalorder %v767_v10, 113  ;;  %vm409_vm6 = vcmp.lt.s32.totalorder %v767_v10, 1  ;;  %vm387_vm7 = vcmp.lt.s32.totalorder %v767_v10, 16 }
  0x90   : > { %v320_v17 = vadd.f32 1.0, %v318_v15  ;;  %v321_v18 = vadd.f32 1.0, %v319_v16  ;;  %v350_v33 = vmul.f32 %v348_v27, %v316_v13  ;;  %v351_v35 = vmul.f32 %v349_v29, %v317_v14  ;;  %v780_v13 = vld [vmem:[%s829_s3] sm:$0xff]  ;;  %v785_v14 = vld [vmem:[%s829_s3 + $0x8] sm:$0xff] }
  0x91   : > { %v449_v16 = vperm.slane %v780_v13, 7  ;;  %v439_v29 = vperm.slane %v785_v14, 6  ;;  %vm398_vm8 = vcmp.lt.s32.totalorder %v767_v10, 15  ;;  %v401_v56 = vperm.slane %v780_v13, 2 }
  0x92   : > { %652 = vrcp.f32 %v320_v17  ;;  %v352_v39 = vmul.f32 1.442695, %v350_v33  ;;  %v354_v41 = vmul.f32 1.442695, %v351_v35  ;;  %v416_v33 = vperm.slane %v780_v13, 4 }
  0x93   : > { %654 = vrcp.f32 %v321_v18  ;;  %vm376_vm9 = vcmp.lt.s32.totalorder %v767_v10, 17  ;;  %v380_v6 = vperm.slane %v785_v14, 0 }
  0x94   : > { %656 = vpow2.f32 %v352_v39 }
  0x95   : > { %658 = vpow2.f32 %v354_v41 }
  0x98   : > { %v653_v19 = vpop.eup %652 }
  0x99   : > { %v655_v20 = vpop.eup %654  ;;  %v324_v21 = vmul.f32 %v653_v19, %v320_v17  ;;  %v450_v17 = vperm.slane %v785_v14, 7 }
  0x9a   : > { %v325_v22 = vmul.f32 %v655_v20, %v321_v18  ;;  %v657_v50 = vpop.eup %656 }
  0x9b   : > { %v326_v23 = vsub.f32 2.0, %v324_v21  ;;  %v659_v52 = vpop.eup %658 }
  0x9c   : > { %v327_v24 = vsub.f32 2.0, %v325_v22 }
  0x9d   : > { %v328_v25 = vmul.f32 %v653_v19, %v326_v23 }
  0x9e   : > { %v329_v26 = vmul.f32 %v655_v20, %v327_v24 }
  0x9f   : > { %v330_v28 = vmul.f32 1.0614054, %v328_v25 }
  0xa0   : > { %v331_v30 = vmul.f32 1.0614054, %v329_v26 }
  0xa1   : > { %v332_v31 = vadd.f32 -1.4531521, %v330_v28  ;;  %v438_v28 = vperm.slane %v780_v13, 6 }
  0xa2   : > { %v333_v32 = vadd.f32 -1.4531521, %v331_v30 }
  0xa3   : > { %v334_v34 = vmul.f32 %v332_v31, %v328_v25  ;;  %v427_v31 = vperm.slane %v780_v13, 5 }
  0xa4   : > { %v335_v36 = vmul.f32 %v333_v32, %v329_v26  ;;  %v428_v32 = vperm.slane %v785_v14, 5 }
  0xa5   : > { %v336_v37 = vadd.f32 1.4214138, %v334_v34 }
  0xa6   : > { %v337_v38 = vadd.f32 1.4214138, %v335_v36 }
  0xa7   : > { %v338_v40 = vmul.f32 %v336_v37, %v328_v25 }
  0xa8   : > { %v339_v42 = vmul.f32 %v337_v38, %v329_v26 }
  0xa9   : > { %v340_v43 = vadd.f32 -0.28449672, %v338_v40  ;;  %v417_v40 = vperm.slane %v785_v14, 4 }
  0xaa   : > { %v341_v44 = vadd.f32 -0.28449672, %v339_v42 }
  0xab   : > { %v342_v45 = vmul.f32 %v340_v43, %v328_v25 }
  0xac   : > { %v343_v46 = vmul.f32 %v341_v44, %v329_v26 }
  0xad   : > { %v344_v47 = vadd.f32 0.2548296, %v342_v45 }
  0xae   : > { %v345_v48 = vadd.f32 0.2548296, %v343_v46 }
  0xaf   : > { %v346_v49 = vmul.f32 %v344_v47, %v328_v25  ;;  %v412_v47 = vperm.slane %v780_v13, 3 }
  0xb0   : > { %v347_v51 = vmul.f32 %v345_v48, %v329_v26  ;;  %v413_v48 = vperm.slane %v785_v14, 3 }
  0xb1   : > { %v356_v53 = vmul.f32 %v657_v50, %v346_v49 }
  0xb2   : > { %v357_v54 = vmul.f32 %v659_v52, %v347_v51 }
  0xb3   : > { %v358_v55 = vsub.f32 1.0, %v356_v53 }
  0xb4   : > { %v359_v58 = vsub.f32 1.0, %v357_v54 }
  0xb5   : > { %v360_v59 = vmul.f32 %v358_v55, %v314_v57  ;;  %v402_v57 = vperm.slane %v785_v14, 2 }
  0xb6   : > { %v361_v63 = vmul.f32 %v359_v58, %v315_v62 }
  0xb7   : > { %v362_v61 = vadd.f32 1.0, %v360_v59  ;;  %v390_v59 = vperm.slane %v780_v13, 1 }
  0xb8   : > { %v363_v1 = vadd.f32 1.0, %v361_v63 }
  0xb9   : > { %v743_v0 = vmul.f32 %v362_v61, %v308_v60  ;;  %v391_v60 = vperm.slane %v785_v14, 1 }
  0xba   : > { %v749_v3 = vmul.f32 %v363_v1, %v309_v2 }
  0xbb   : > { %431 = vrot.lane.b32.xlu0 %v743_v0, %s670_s11  ;;  %442 = vrot.lane.b32.xlu2 %v743_v0, %s671_s12  ;;  %v418_v45 = vmul.f32 %v416_v33, %v743_v0 }
  0xbc   : > { %453 = vrot.lane.b32.xlu1 %v743_v0, %s672_s13  ;;  %v419_v46 = vmul.f32 %v417_v40, %v749_v3 }
  0xc3   : > { %422 = vrot.lane.b32.xlu0 %v749_v3, %s673_s14  ;;  %444 = vrot.lane.b32.xlu2 %v749_v3, %s671_s12 }
  0xc4   : > { %455 = vrot.lane.b32.xlu1 %v749_v3, %s672_s13  ;;  %s285_s13 = scalar_lea.vmem %s832_s6, %s629_s30 }
  0xcb   : > { %394 = vrot.lane.b32.xlu0 %v743_v0, %s674_s15  ;;  %420 = vrot.lane.b32.xlu2 %v743_v0, %s673_s14  ;;  %s624_s14 = sshll.u32 %s835_s25, 3 }
  0xcc   : > { %433 = vrot.lane.b32.xlu1 %v749_v3, %s670_s11 }
  0xd3   : > { %385 = vrot.lane.b32.xlu0 %v749_v3, %s675_s16  ;;  %407 = vrot.lane.b32.xlu2 %v749_v3, %s676_s17 }
  0xd4   : > { %405 = vrot.lane.b32.xlu1 %v743_v0, %s676_s17  ;;  %s289_s17 = scalar_lea.vmem %s833_s7, %s624_s14 }
  0xdb   : > { %468 = vperm.xlu0 %649, %v465_v4   ;;  %383 = vrot.lane.b32.xlu2 %v743_v0, %s675_s16 }
  0xdc   : > { %396 = vrot.lane.b32.xlu1 %v749_v3, %s674_s15 }
  0xe3   : > { %372 = vrot.lane.b32.xlu2 %v749_v3, %s677_s20 }
  0xe4   : > { %370 = vrot.lane.b32.xlu1 %v743_v0, %s677_s20 }
 0x115   : > { %v443_v5 = vpop.permute.xlu2 %442 }
 0x11d   : > { %v445_v7 = vpop.permute.xlu2 %444 }
 0x11e   : > { %v447_v18 = vsel %vm446_vm2, %v443_v5, %v445_v7  ;;  %v448_v19 = vsel %vm446_vm2, %v445_v7, %v443_v5  ;;  %v379_v5 = vperm.slane %v780_v13, 0 }
 0x11f   : > { %v451_v26 = vmul.f32 %v449_v16, %v447_v18  ;;  %v452_v27 = vmul.f32 %v450_v17, %v448_v19  ;;  %v464_v16 = vld [vmem:[%s830_s4] sm:$0xff] }
 0x125   : > { %v421_v22 = vpop.permute.xlu2 %420 }
 0x12d   : > { %v432_v8 = vpop.permute.xlu0 %431  ;;  %v408_v41 = vpop.permute.xlu2 %407 }
 0x12e   : > { %v454_v9 = vpop.permute.xlu1 %453 }
 0x135   : > { %v423_v23 = vpop.permute.xlu0 %422  ;;  %v384_v54 = vpop.permute.xlu2 %383 }
 0x136   : > { %v456_v15 = vpop.permute.xlu1 %455  ;;  %v425_v34 = vsel %vm424_vm4, %v421_v22, %v423_v23  ;;  %v426_v35 = vsel %vm424_vm4, %v423_v23, %v421_v22 }
 0x137   : > { %v458_v20 = vsel %vm457_vm3, %v454_v9, %v456_v15  ;;  %v459_v21 = vsel %vm457_vm3, %v456_v15, %v454_v9  ;;  %v429_v43 = vmul.f32 %v427_v31, %v425_v34  ;;  %v430_v44 = vmul.f32 %v428_v32, %v426_v35 }
 0x138   : > { %v462_v24 = vmul.f32 %v650_v11, %v458_v20  ;;  %v463_v25 = vmul.f32 %v651_v12, %v459_v21 }
 0x13a   : > { %482 = vmatpush.msra.mxu0 %v462_v24  ;;  %502 = vmatpush.msra.mxu1 %v463_v25 }
 0x13c   : > { %483 = vmatpush.msra.mxu0 %v451_v26  ;;  %503 = vmatpush.msra.mxu1 %v452_v27 }
 0x13d   : > { %v395_v42 = vpop.permute.xlu0 %394  ;;  %v373_v7 = vpop.permute.xlu2 %372 }
 0x13e   : > { %v434_v30 = vpop.permute.xlu1 %433 }
 0x13f   : > { %v436_v36 = vsel %vm435_vm5, %v432_v8, %v434_v30  ;;  %v437_v37 = vsel %vm435_vm5, %v434_v30, %v432_v8 }
 0x140   : > { %v440_v38 = vmul.f32 %v438_v28, %v436_v36  ;;  %v441_v39 = vmul.f32 %v439_v29, %v437_v37 }
 0x142   : > { %484 = vmatpush.msra.mxu0 %v440_v38  ;;  %504 = vmatpush.msra.mxu1 %v441_v39 }
 0x144   : > { %485 = vmatpush.msra.mxu0 %v429_v43  ;;  %505 = vmatpush.msra.mxu1 %v430_v44 }
 0x145   : > { %v386_v55 = vpop.permute.xlu0 %385 }
 0x146   : > { %506 = vmatpush.msra.mxu1 %v419_v46  ;;  %v406_v49 = vpop.permute.xlu1 %405  ;;  %486 = vmatpush.msra.mxu0 %v418_v45  ;;  %v388_v61 = vsel %vm387_vm7, %v384_v54, %v386_v55  ;;  %v389_v62 = vsel %vm387_vm7, %v386_v55, %v384_v54 }
 0x147   : > { %v410_v50 = vsel %vm409_vm6, %v406_v49, %v408_v41  ;;  %v411_v51 = vsel %vm409_vm6, %v408_v41, %v406_v49  ;;  %v392_v3 = vmul.f32 %v390_v59, %v389_v62  ;;  %v393_v4 = vmul.f32 %v391_v60, %v388_v61 }
 0x148   : > { %v414_v52 = vmul.f32 %v412_v47, %v411_v51  ;;  %v415_v53 = vmul.f32 %v413_v48, %v410_v50 }
 0x14a   : > { %487 = vmatpush.msra.mxu0 %v414_v52  ;;  %507 = vmatpush.msra.mxu1 %v415_v53 }
 0x14d   : > { %v469_v10 = vpop.permute.xlu0 %468 }
 0x14e   : > { %v397_v58 = vpop.permute.xlu1 %396 }
 0x14f   : > { %v399_v63 = vsel %vm398_vm8, %v395_v42, %v397_v58  ;;  %v400_v0 = vsel %vm398_vm8, %v397_v58, %v395_v42 }
 0x150   : > { %v403_v1 = vmul.f32 %v401_v56, %v400_v0  ;;  %v404_v2 = vmul.f32 %v402_v57, %v399_v63 }
 0x152   : > { %488 = vmatpush.msra.mxu0 %v403_v1  ;;  %508 = vmatpush.msra.mxu1 %v404_v2 }
 0x154   : > { %489 = vmatpush.msra.mxu0 %v392_v3  ;;  %509 = vmatpush.msra.mxu1 %v393_v4 }
 0x156   : > { %v371_v8 = vpop.permute.xlu1 %370 }
 0x157   : > { %v377_v9 = vsel %vm376_vm9, %v371_v8, %v373_v7  ;;  %v378_v11 = vsel %vm376_vm9, %v373_v7, %v371_v8 }
 0x158   : > { %v381_v12 = vmul.f32 %v379_v5, %v378_v11  ;;  %v382_v15 = vmul.f32 %v380_v6, %v377_v9 }
 0x15a   : > { %490 = vmatpush.msra.mxu0 %v381_v12  ;;  %510 = vmatpush.msra.mxu1 %v382_v15 }
 0x15b   : > { %625 = vmatmul.msk.f32.vlgmr.msra.gmra.mxu0 %vm471_vm10, %v464_v16  ;;  %626 = vmatmul.msk.f32.vlgmr.msra.gmra.mxu1 %vm471_vm10, %v464_v16 }
 0x1d8   : > { %v492_v13 = vpop.f32.mrf.mxu0  ;;  %v512_v14 = vpop.f32.mrf.mxu1 }
 0x1d9   : > { %v493_v17 = vadd.f32 %v492_v13, %v469_v10  ;;  %v513_v18 = vadd.f32 %v512_v14, %v469_v10 }
 0x1db   : > { %515 = vst [vmem:[%s285_s13] sm:$0xff] %v493_v17  ;;  %v517_v19 = vadd.f32 %v513_v18, %v493_v17  ;;  %v522_v20 = vmul.f32 %v493_v17, %v493_v17  ;;  %v523_v21 = vmul.f32 %v513_v18, %v513_v18 }
 0x1dc   : > { %516 = vst [vmem:[%s285_s13 + $0x8] sm:$0xff] %v513_v18 }
 0x1dd   : > { %518 = vadd.xlane.f32.xlu1 %v517_v19  ;;  %v524_v22 = vadd.f32 %v523_v21, %v522_v20 }
 0x1df   : > { %525 = vadd.xlane.f32.xlu2 %v524_v22 }
 0x250   : > { %v519_v23 = vpop.xlane.xlu1 %518 }
 0x251   : > { %521 = vst.msk [vmem:[%s289_s17] sm:$0xff] %vm520_vm11, %v519_v23 }
 0x252   : > { %v526_v24 = vpop.xlane.xlu2 %525 }
 0x253   : > { %528 = vst.msk [vmem:[%s289_s17] sm:$0xff] %vm527_vm12, %v526_v24 }
 0x254 PF: > { %s18_s24 = sadd.s32 1, %s666_s24  }
 0x255   : > { %p15_p4 = scmp.ge.s32.totalorder %s18_s24, 4  }
 0x257   :  { %17 = sbr.rel (!%p15_p4) target bundleno = 1 (0x1), region = 86 }

</bundles_post_ra>
